<compile_context>
chip_gen: v7x
topology: tpu7x:2x2x1
jax: 0.10.0
libtpu: 0.0.40
codegen_flags: <defaults>
</compile_context>

<pallas_src>
import functools

import jax
import jax.numpy as jnp
from jax.experimental import pallas as pl
from jax.experimental.pallas import tpu as pltpu


def _round_up(x, m):
    return (x + m - 1) // m * m


def _decoder_kernel(x_ref, w1_ref, b1_ref, w2_ref, b2_ref, srep_ref, mask_ref,
                    o_ref, *, ti, cout):
    # x_ref   : (Cin, ti, tj)          input tile (lanes = input cols)
    # w1_ref  : (4*hidden, Cin)        rows = (q=(ki1,kj1), h)
    # b1_ref  : (4*hidden, 1)
    # w2_ref  : (4, 4*Cout, 4*hidden)  [b] -> rows=(co,a), cols=(q,h)
    # b2_ref  : (4*Cout, 1)            rows = (co, a)
    # srep_ref: (tj, 4*tj)             0/1 lane-replication matrix
    # mask_ref: (4, 1, 4*tj)           0/1 column-phase masks
    # o_ref   : (Cout, ti, 4, 4*tj)    output block (lanes = output cols)
    w1 = w1_ref[...]
    b1 = b1_ref[...]
    b2 = b2_ref[...]
    srep = srep_ref[...]

    for ii in range(ti):
        x_row = x_ref[:, ii, :]                                            # (Cin, tj)
        # replicate each input column to its 4 output columns (0/1 matmul, MXU idle)
        xr = jnp.dot(x_row, srep, preferred_element_type=jnp.float32)      # (Cin, L)
        y1 = jnp.dot(w1, xr, preferred_element_type=jnp.float32) + b1
        y1 = jnp.maximum(y1, 0.0)                                          # (4h, L)
        acc = None
        for b in range(4):
            t = jnp.dot(w2_ref[b], y1, preferred_element_type=jnp.float32)  # (4Cout, L)
            t = t * mask_ref[b]                   # keep lanes whose column phase == b
            acc = t if acc is None else acc + t
        outv = acc + b2                                                    # rows (co, a)
        for co in range(cout):
            o_ref[co, ii, :, :] = outv[4 * co:4 * (co + 1), :]             # (4, L) slab


def _choose_tiles(N, cin, H, W, hidden, cout):
    """Pick (ti, tj) honoring the (8,128) block rules and a VMEM budget."""
    ti_opts = [t for t in (16, 8) if H % t == 0] or [H]
    tj_opts = [t for t in (256, 128) if W % t == 0] or [W]

    def est(ti, tj):
        f = 4
        L = _round_up(4 * tj, 128)
        out_blk = cout * ti * 8 * L * f                          # (Cout, ti, 4->8, L)
        in_blk = cin * _round_up(ti, 8) * _round_up(tj, 128) * f
        resident = f * (
            _round_up(4 * hidden, 8) * _round_up(cin, 128)                 # w1p
            + 4 * _round_up(4 * cout, 8) * _round_up(4 * hidden, 128)      # w2sel
            + _round_up(tj, 8) * L                                          # srep
            + 4 * 8 * L                                                     # masks
            + (_round_up(4 * hidden, 8) + _round_up(4 * cout, 8)) * 128)    # biases
        temps = f * L * (_round_up(cin, 8) + _round_up(4 * hidden, 8)
                         + 3 * _round_up(4 * cout, 8))                      # xr/y1/acc
        return 2 * (out_blk + in_blk) + resident + temps        # double-buffered blocks

    budget = 24 * 1024 * 1024          # headroom inside v7x's 64 MiB physical VMEM
    candidates = [(ti, tj) for ti in ti_opts for tj in tj_opts]
    fitting = [c for c in candidates if est(*c) <= budget] or [candidates[-1]]
    # prefer >= 4 grid steps (2 per TensorCore on v7x megacore) when possible
    for ti, tj in fitting:
        if N * (H // ti) * (W // tj) >= 4:
            return ti, tj, est(ti, tj)
    ti, tj = fitting[0]
    # TODO(synk): pathological shapes (huge W not divisible by 128, large prime H)
    # fall back to full-extent blocks and may exceed the VMEM budget.
    return ti, tj, est(ti, tj)


def conv_decoder_forward(x_nchw, w1, b1, w2, b2):
    """Fused 2x ConvTranspose2d(k=2, s=2) with ReLU between. -> (N, Cout, 4H, 4W)."""
    N, Cin, H, W = x_nchw.shape
    hidden = w1.shape[1]
    Cout = w2.shape[1]

    ti, tj, vmem_est = _choose_tiles(N, Cin, H, W, hidden, Cout)
    L = 4 * tj

    # ---- weight packing (tiny, traced once per call) ------------------------
    # layer 1: rows = (q = 2*ki1 + kj1, h), cols = ci
    w1p = jnp.transpose(w1, (2, 3, 1, 0)).reshape(4 * hidden, Cin).astype(jnp.float32)
    b1p = jnp.tile(b1, 4).reshape(4 * hidden, 1).astype(jnp.float32)

    # layer 2 folded with the phase structure: w2sel[b, co*4+a, q*hidden+h]
    a_idx = jnp.arange(4)
    b_idx = jnp.arange(4)
    ki1, ki2 = a_idx >> 1, a_idx & 1
    kj1, kj2 = b_idx >> 1, b_idx & 1
    w2ab = w2[:, :, ki2[:, None], kj2[None, :]].astype(jnp.float32)   # (h, Cout, 4a, 4b)
    q = 2 * ki1[:, None] + kj1[None, :]                               # (4a, 4b)
    qsel = (jnp.arange(4)[None, None, :] == q[:, :, None]).astype(jnp.float32)
    w2sel = jnp.einsum('hcab,abq->bcaqh', w2ab, qsel).reshape(4, 4 * Cout, 4 * hidden)
    b2p = jnp.repeat(b2, 4).reshape(4 * Cout, 1).astype(jnp.float32)

    # column replication matrix + lane-phase masks (tile-local, reused everywhere)
    col = jnp.arange(L)
    srep = (col[None, :] // 4 == jnp.arange(tj)[:, None]).astype(jnp.float32)   # (tj, L)
    masks = (col[None, None, :] % 4
             == jnp.arange(4)[:, None, None]).astype(jnp.float32)               # (4,1,L)

    grid = (N, H // ti, W // tj)
    kernel = functools.partial(_decoder_kernel, ti=ti, cout=Cout)

    out = pl.pallas_call(
        kernel,
        out_shape=jax.ShapeDtypeStruct((N, Cout, H, 4, 4 * W), jnp.float32),
        grid_spec=pltpu.PrefetchScalarGridSpec(
            num_scalar_prefetch=0,
            grid=grid,
            in_specs=[
                pl.BlockSpec((None, Cin, ti, tj), lambda n, i, j: (n, 0, i, j)),
                pl.BlockSpec((4 * hidden, Cin), lambda n, i, j: (0, 0)),
                pl.BlockSpec((4 * hidden, 1), lambda n, i, j: (0, 0)),
                pl.BlockSpec((4, 4 * Cout, 4 * hidden), lambda n, i, j: (0, 0, 0)),
                pl.BlockSpec((4 * Cout, 1), lambda n, i, j: (0, 0)),
                pl.BlockSpec((tj, L), lambda n, i, j: (0, 0)),
                pl.BlockSpec((4, 1, L), lambda n, i, j: (0, 0, 0)),
            ],
            out_specs=pl.BlockSpec((None, Cout, ti, 4, L),
                                   lambda n, i, j: (n, 0, i, 0, j)),
        ),
        compiler_params=pltpu.CompilerParams(
            dimension_semantics=("parallel", "parallel", "parallel"),
            vmem_limit_bytes=int(min(max(vmem_est + 8 * 2**20, 32 * 2**20),
                                     60 * 2**20)),
        ),
    )(x_nchw.astype(jnp.float32), w1p, b1p, w2sel, b2p, srep, masks)

    # (N, Cout, H, 4, 4W) -> (N, Cout, 4H, 4W): contiguous-dim merge, zero-copy.
    return out.reshape(N, Cout, 4 * H, 4 * W)


class ConvDecoderPallas:
    def __init__(self, input_dim, hidden_dim, output_dim, image_shape, key):
        k1, k2, k3, k4 = jax.random.split(key, 4)
        # deterministic synthetic params (PyTorch ConvTranspose2d weight layout)
        self.w1 = jax.random.normal(k1, (input_dim, hidden_dim, 2, 2),
                                    jnp.float32) * 0.1
        self.b1 = jax.random.normal(k2, (hidden_dim,), jnp.float32) * 0.1
        self.w2 = jax.random.normal(k3, (hidden_dim, output_dim, 2, 2),
                                    jnp.float32) * 0.1
        self.b2 = jax.random.normal(k4, (output_dim,), jnp.float32) * 0.1
        self.image_shape = image_shape

    def __call__(self, x_nchw):
        y = conv_decoder_forward(x_nchw, self.w1, self.b1, self.w2, self.b2)
        return y.reshape(-1, *self.image_shape)       # x.view(-1, *image_shape)


def _reference(model, x_nchw):
    """Pure-jnp reference of the same math (for a sanity check)."""
    def deconv(x, w, b, relu):
        y = jnp.einsum('nchw,cokl->nohkwl', x, w)
        n, co, h, k, wdim, l = y.shape
        y = y.reshape(n, co, h * k, wdim * l) + b[None, :, None, None]
        return jnp.maximum(y, 0.0) if relu else y

    y = deconv(x_nchw, model.w1, model.b1, True)
    y = deconv(y, model.w2, model.b2, False)
    return y.reshape(-1, *model.image_shape)


if __name__ == "__main__":
    key = jax.random.PRNGKey(0)
    k_in, k_par = jax.random.split(key)

    batch, input_dim, hidden_dim, output_dim = 2, 4, 8, 3
    H = W = 16
    image_shape = (output_dim, 4 * H, 4 * W)          # after two 2x upsamples

    x = jax.random.normal(k_in, (batch, input_dim, H, W), jnp.float32)

    model = ConvDecoderPallas(input_dim, hidden_dim, output_dim,
                              image_shape, k_par)

    out = jax.jit(model.__call__)(x)
    out = jax.block_until_ready(out)

    ref = jax.block_until_ready(_reference(model, x))
    assert out.shape == (batch, *image_shape), out.shape
    assert jnp.allclose(out, ref, atol=1e-4, rtol=1e-4), \
        float(jnp.max(jnp.abs(out - ref)))

    print("KERNEL_OK")
</pallas_src>

<mosaic_0001>
module attributes {stable_mosaic.version = 11 : i64} {
  func.func @_decoder_kernel(%arg0: i32, %arg1: i32, %arg2: i32, %arg3: memref<1x4x8x16xf32, #tpu.memory_space<vmem>>, %arg4: memref<32x4xf32, #tpu.memory_space<vmem>>, %arg5: memref<32x1xf32, #tpu.memory_space<vmem>>, %arg6: memref<4x12x32xf32, #tpu.memory_space<vmem>>, %arg7: memref<12x1xf32, #tpu.memory_space<vmem>>, %arg8: memref<16x64xf32, #tpu.memory_space<vmem>>, %arg9: memref<4x1x64xf32, #tpu.memory_space<vmem>>, %arg10: memref<1x3x8x4x64xf32, #tpu.memory_space<vmem>>) attributes {dimension_semantics = [#tpu.dimension_semantics<parallel>, #tpu.dimension_semantics<parallel>, #tpu.dimension_semantics<parallel>], iteration_bounds = array<i64: 2, 2, 1>, scalar_prefetch = 0 : i64, scratch_operands = 0 : i64, tpu.core_type = #tpu.core_type<tc>, window_params = [{transform_indices = @transform_0, window_bounds = array<i64: 1, 4, 8, 16>}, {pipeline_mode = #tpu.pipeline_mode<synchronous>, transform_indices = @transform_1, window_bounds = array<i64: 32, 4>}, {pipeline_mode = #tpu.pipeline_mode<synchronous>, transform_indices = @transform_2, window_bounds = array<i64: 32, 1>}, {pipeline_mode = #tpu.pipeline_mode<synchronous>, transform_indices = @transform_3, window_bounds = array<i64: 4, 12, 32>}, {pipeline_mode = #tpu.pipeline_mode<synchronous>, transform_indices = @transform_4, window_bounds = array<i64: 12, 1>}, {pipeline_mode = #tpu.pipeline_mode<synchronous>, transform_indices = @transform_5, window_bounds = array<i64: 16, 64>}, {pipeline_mode = #tpu.pipeline_mode<synchronous>, transform_indices = @transform_6, window_bounds = array<i64: 4, 1, 64>}, {transform_indices = @transform_7, window_bounds = array<i64: 1, 3, 8, 4, 64>}]} {
    %c0 = arith.constant 0 : index
    %c0_0 = arith.constant 0 : index
    %0 = vector.load %arg4[%c0, %c0_0] : memref<32x4xf32, #tpu.memory_space<vmem>>, vector<32x4xf32>
    %c0_1 = arith.constant 0 : index
    %c0_2 = arith.constant 0 : index
    %1 = vector.load %arg5[%c0_1, %c0_2] : memref<32x1xf32, #tpu.memory_space<vmem>>, vector<32x1xf32>
    %c0_3 = arith.constant 0 : index
    %c0_4 = arith.constant 0 : index
    %2 = vector.load %arg7[%c0_3, %c0_4] : memref<12x1xf32, #tpu.memory_space<vmem>>, vector<12x1xf32>
    %c0_5 = arith.constant 0 : index
    %c0_6 = arith.constant 0 : index
    %3 = vector.load %arg8[%c0_5, %c0_6] : memref<16x64xf32, #tpu.memory_space<vmem>>, vector<16x64xf32>
    %c0_7 = arith.constant 0 : index
    %c0_8 = arith.constant 0 : index
    %c0_9 = arith.constant 0 : index
    %c0_10 = arith.constant 0 : index
    %4 = vector.load %arg3[%c0_7, %c0_8, %c0_9, %c0_10] : memref<1x4x8x16xf32, #tpu.memory_space<vmem>>, vector<1x4x1x16xf32>
    %5 = vector.shape_cast %4 : vector<1x4x1x16xf32> to vector<4x16xf32>
    %cst = arith.constant dense<0.000000e+00> : vector<4x64xf32>
    %6 = tpu.matmul %5, %3, %cst {dimension_numbers = #tpu.dot_dimension_numbers<[1], [0], [0], [1], [0, 0, 1, 1], [], []>} : vector<4x16xf32>, vector<16x64xf32>, vector<4x64xf32> -> vector<4x64xf32>
    %cst_11 = arith.constant dense<0.000000e+00> : vector<32x64xf32>
    %7 = tpu.matmul %0, %6, %cst_11 {dimension_numbers = #tpu.dot_dimension_numbers<[1], [0], [0], [1], [0, 0, 1, 1], [], []>} : vector<32x4xf32>, vector<4x64xf32>, vector<32x64xf32> -> vector<32x64xf32>
    %8 = vector.broadcast %1 : vector<32x1xf32> to vector<32x64xf32>
    %9 = arith.addf %7, %8 : vector<32x64xf32>
    %cst_12 = arith.constant 0.000000e+00 : f32
    %10 = vector.broadcast %cst_12 : f32 to vector<32x64xf32>
    %11 = arith.maximumf %9, %10 : vector<32x64xf32>
    %c0_13 = arith.constant 0 : index
    %c0_14 = arith.constant 0 : index
    %c0_15 = arith.constant 0 : index
    %12 = vector.load %arg6[%c0_13, %c0_14, %c0_15] : memref<4x12x32xf32, #tpu.memory_space<vmem>>, vector<1x12x32xf32>
    %13 = vector.shape_cast %12 : vector<1x12x32xf32> to vector<12x32xf32>
    %cst_16 = arith.constant dense<0.000000e+00> : vector<12x64xf32>
    %14 = tpu.matmul %13, %11, %cst_16 {dimension_numbers = #tpu.dot_dimension_numbers<[1], [0], [0], [1], [0, 0, 1, 1], [], []>} : vector<12x32xf32>, vector<32x64xf32>, vector<12x64xf32> -> vector<12x64xf32>
    %c0_17 = arith.constant 0 : index
    %c0_18 = arith.constant 0 : index
    %c0_19 = arith.constant 0 : index
    %15 = vector.load %arg9[%c0_17, %c0_18, %c0_19] : memref<4x1x64xf32, #tpu.memory_space<vmem>>, vector<1x1x64xf32>
    %16 = vector.shape_cast %15 : vector<1x1x64xf32> to vector<1x64xf32>
    %17 = vector.broadcast %16 : vector<1x64xf32> to vector<12x64xf32>
    %18 = arith.mulf %14, %17 : vector<12x64xf32>
    %c1 = arith.constant 1 : index
    %c0_20 = arith.constant 0 : index
    %c0_21 = arith.constant 0 : index
    %19 = vector.load %arg6[%c1, %c0_20, %c0_21] : memref<4x12x32xf32, #tpu.memory_space<vmem>>, vector<1x12x32xf32>
    %20 = vector.shape_cast %19 : vector<1x12x32xf32> to vector<12x32xf32>
    %cst_22 = arith.constant dense<0.000000e+00> : vector<12x64xf32>
    %21 = tpu.matmul %20, %11, %cst_22 {dimension_numbers = #tpu.dot_dimension_numbers<[1], [0], [0], [1], [0, 0, 1, 1], [], []>} : vector<12x32xf32>, vector<32x64xf32>, vector<12x64xf32> -> vector<12x64xf32>
    %c1_23 = arith.constant 1 : index
    %c0_24 = arith.constant 0 : index
    %c0_25 = arith.constant 0 : index
    %22 = vector.load %arg9[%c1_23, %c0_24, %c0_25] : memref<4x1x64xf32, #tpu.memory_space<vmem>>, vector<1x1x64xf32>
    %23 = vector.shape_cast %22 : vector<1x1x64xf32> to vector<1x64xf32>
    %24 = vector.broadcast %23 : vector<1x64xf32> to vector<12x64xf32>
    %25 = arith.mulf %21, %24 : vector<12x64xf32>
    %26 = arith.addf %18, %25 : vector<12x64xf32>
    %c2 = arith.constant 2 : index
    %c0_26 = arith.constant 0 : index
    %c0_27 = arith.constant 0 : index
    %27 = vector.load %arg6[%c2, %c0_26, %c0_27] : memref<4x12x32xf32, #tpu.memory_space<vmem>>, vector<1x12x32xf32>
    %28 = vector.shape_cast %27 : vector<1x12x32xf32> to vector<12x32xf32>
    %cst_28 = arith.constant dense<0.000000e+00> : vector<12x64xf32>
    %29 = tpu.matmul %28, %11, %cst_28 {dimension_numbers = #tpu.dot_dimension_numbers<[1], [0], [0], [1], [0, 0, 1, 1], [], []>} : vector<12x32xf32>, vector<32x64xf32>, vector<12x64xf32> -> vector<12x64xf32>
    %c2_29 = arith.constant 2 : index
    %c0_30 = arith.constant 0 : index
    %c0_31 = arith.constant 0 : index
    %30 = vector.load %arg9[%c2_29, %c0_30, %c0_31] : memref<4x1x64xf32, #tpu.memory_space<vmem>>, vector<1x1x64xf32>
    %31 = vector.shape_cast %30 : vector<1x1x64xf32> to vector<1x64xf32>
    %32 = vector.broadcast %31 : vector<1x64xf32> to vector<12x64xf32>
    %33 = arith.mulf %29, %32 : vector<12x64xf32>
    %34 = arith.addf %26, %33 : vector<12x64xf32>
    %c3 = arith.constant 3 : index
    %c0_32 = arith.constant 0 : index
    %c0_33 = arith.constant 0 : index
    %35 = vector.load %arg6[%c3, %c0_32, %c0_33] : memref<4x12x32xf32, #tpu.memory_space<vmem>>, vector<1x12x32xf32>
    %36 = vector.shape_cast %35 : vector<1x12x32xf32> to vector<12x32xf32>
    %cst_34 = arith.constant dense<0.000000e+00> : vector<12x64xf32>
    %37 = tpu.matmul %36, %11, %cst_34 {dimension_numbers = #tpu.dot_dimension_numbers<[1], [0], [0], [1], [0, 0, 1, 1], [], []>} : vector<12x32xf32>, vector<32x64xf32>, vector<12x64xf32> -> vector<12x64xf32>
    %c3_35 = arith.constant 3 : index
    %c0_36 = arith.constant 0 : index
    %c0_37 = arith.constant 0 : index
    %38 = vector.load %arg9[%c3_35, %c0_36, %c0_37] : memref<4x1x64xf32, #tpu.memory_space<vmem>>, vector<1x1x64xf32>
    %39 = vector.shape_cast %38 : vector<1x1x64xf32> to vector<1x64xf32>
    %40 = vector.broadcast %39 : vector<1x64xf32> to vector<12x64xf32>
    %41 = arith.mulf %37, %40 : vector<12x64xf32>
    %42 = arith.addf %34, %41 : vector<12x64xf32>
    %43 = vector.broadcast %2 : vector<12x1xf32> to vector<12x64xf32>
    %44 = arith.addf %42, %43 : vector<12x64xf32>
    %45 = vector.extract_strided_slice %44 {offsets = [0, 0], sizes = [4, 64], strides = [1, 1]} : vector<12x64xf32> to vector<4x64xf32>
    %c0_38 = arith.constant 0 : index
    %c0_39 = arith.constant 0 : index
    %c0_40 = arith.constant 0 : index
    %c0_41 = arith.constant 0 : index
    %c0_42 = arith.constant 0 : index
    %46 = vector.load %arg10[%c0_38, %c0_39, %c0_40, %c0_41, %c0_42] : memref<1x3x8x4x64xf32, #tpu.memory_space<vmem>>, vector<1x1x1x4x64xf32>
    %47 = vector.shape_cast %46 : vector<1x1x1x4x64xf32> to vector<4x64xf32>
    %48 = vector.shape_cast %45 : vector<4x64xf32> to vector<1x1x1x4x64xf32>
    tpu.vector_store %arg10[%c0_38, %c0_39, %c0_40, %c0_41, %c0_42], %48 {strides = array<i32>} : memref<1x3x8x4x64xf32, #tpu.memory_space<vmem>>, vector<1x1x1x4x64xf32>,
    %49 = vector.extract_strided_slice %44 {offsets = [4, 0], sizes = [4, 64], strides = [1, 1]} : vector<12x64xf32> to vector<4x64xf32>
    %c0_43 = arith.constant 0 : index
    %c1_44 = arith.constant 1 : index
    %c0_45 = arith.constant 0 : index
    %c0_46 = arith.constant 0 : index
    %c0_47 = arith.constant 0 : index
    %50 = vector.load %arg10[%c0_43, %c1_44, %c0_45, %c0_46, %c0_47] : memref<1x3x8x4x64xf32, #tpu.memory_space<vmem>>, vector<1x1x1x4x64xf32>
    %51 = vector.shape_cast %50 : vector<1x1x1x4x64xf32> to vector<4x64xf32>
    %52 = vector.shape_cast %49 : vector<4x64xf32> to vector<1x1x1x4x64xf32>
    tpu.vector_store %arg10[%c0_43, %c1_44, %c0_45, %c0_46, %c0_47], %52 {strides = array<i32>} : memref<1x3x8x4x64xf32, #tpu.memory_space<vmem>>, vector<1x1x1x4x64xf32>,
    %53 = vector.extract_strided_slice %44 {offsets = [8, 0], sizes = [4, 64], strides = [1, 1]} : vector<12x64xf32> to vector<4x64xf32>
    %c0_48 = arith.constant 0 : index
    %c2_49 = arith.constant 2 : index
    %c0_50 = arith.constant 0 : index
    %c0_51 = arith.constant 0 : index
    %c0_52 = arith.constant 0 : index
    %54 = vector.load %arg10[%c0_48, %c2_49, %c0_50, %c0_51, %c0_52] : memref<1x3x8x4x64xf32, #tpu.memory_space<vmem>>, vector<1x1x1x4x64xf32>
    %55 = vector.shape_cast %54 : vector<1x1x1x4x64xf32> to vector<4x64xf32>
    %56 = vector.shape_cast %53 : vector<4x64xf32> to vector<1x1x1x4x64xf32>
    tpu.vector_store %arg10[%c0_48, %c2_49, %c0_50, %c0_51, %c0_52], %56 {strides = array<i32>} : memref<1x3x8x4x64xf32, #tpu.memory_space<vmem>>, vector<1x1x1x4x64xf32>,
    %c0_53 = arith.constant 0 : index
    %c0_54 = arith.constant 0 : index
    %c1_55 = arith.constant 1 : index
    %c0_56 = arith.constant 0 : index
    %57 = vector.load %arg3[%c0_53, %c0_54, %c1_55, %c0_56] : memref<1x4x8x16xf32, #tpu.memory_space<vmem>>, vector<1x4x1x16xf32>
    %58 = vector.shape_cast %57 : vector<1x4x1x16xf32> to vector<4x16xf32>
    %cst_57 = arith.constant dense<0.000000e+00> : vector<4x64xf32>
    %59 = tpu.matmul %58, %3, %cst_57 {dimension_numbers = #tpu.dot_dimension_numbers<[1], [0], [0], [1], [0, 0, 1, 1], [], []>} : vector<4x16xf32>, vector<16x64xf32>, vector<4x64xf32> -> vector<4x64xf32>
    %cst_58 = arith.constant dense<0.000000e+00> : vector<32x64xf32>
    %60 = tpu.matmul %0, %59, %cst_58 {dimension_numbers = #tpu.dot_dimension_numbers<[1], [0], [0], [1], [0, 0, 1, 1], [], []>} : vector<32x4xf32>, vector<4x64xf32>, vector<32x64xf32> -> vector<32x64xf32>
    %61 = vector.broadcast %1 : vector<32x1xf32> to vector<32x64xf32>
    %62 = arith.addf %60, %61 : vector<32x64xf32>
    %cst_59 = arith.constant 0.000000e+00 : f32
    %63 = vector.broadcast %cst_59 : f32 to vector<32x64xf32>
    %64 = arith.maximumf %62, %63 : vector<32x64xf32>
    %c0_60 = arith.constant 0 : index
    %c0_61 = arith.constant 0 : index
    %c0_62 = arith.constant 0 : index
    %65 = vector.load %arg6[%c0_60, %c0_61, %c0_62] : memref<4x12x32xf32, #tpu.memory_space<vmem>>, vector<1x12x32xf32>
    %66 = vector.shape_cast %65 : vector<1x12x32xf32> to vector<12x32xf32>
    %cst_63 = arith.constant dense<0.000000e+00> : vector<12x64xf32>
    %67 = tpu.matmul %66, %64, %cst_63 {dimension_numbers = #tpu.dot_dimension_numbers<[1], [0], [0], [1], [0, 0, 1, 1], [], []>} : vector<12x32xf32>, vector<32x64xf32>, vector<12x64xf32> -> vector<12x64xf32>
    %c0_64 = arith.constant 0 : index
    %c0_65 = arith.constant 0 : index
    %c0_66 = arith.constant 0 : index
    %68 = vector.load %arg9[%c0_64, %c0_65, %c0_66] : memref<4x1x64xf32, #tpu.memory_space<vmem>>, vector<1x1x64xf32>
    %69 = vector.shape_cast %68 : vector<1x1x64xf32> to vector<1x64xf32>
    %70 = vector.broadcast %69 : vector<1x64xf32> to vector<12x64xf32>
    %71 = arith.mulf %67, %70 : vector<12x64xf32>
    %c1_67 = arith.constant 1 : index
    %c0_68 = arith.constant 0 : index
    %c0_69 = arith.constant 0 : index
    %72 = vector.load %arg6[%c1_67, %c0_68, %c0_69] : memref<4x12x32xf32, #tpu.memory_space<vmem>>, vector<1x12x32xf32>
    %73 = vector.shape_cast %72 : vector<1x12x32xf32> to vector<12x32xf32>
    %cst_70 = arith.constant dense<0.000000e+00> : vector<12x64xf32>
    %74 = tpu.matmul %73, %64, %cst_70 {dimension_numbers = #tpu.dot_dimension_numbers<[1], [0], [0], [1], [0, 0, 1, 1], [], []>} : vector<12x32xf32>, vector<32x64xf32>, vector<12x64xf32> -> vector<12x64xf32>
    %c1_71 = arith.constant 1 : index
    %c0_72 = arith.constant 0 : index
    %c0_73 = arith.constant 0 : index
    %75 = vector.load %arg9[%c1_71, %c0_72, %c0_73] : memref<4x1x64xf32, #tpu.memory_space<vmem>>, vector<1x1x64xf32>
    %76 = vector.shape_cast %75 : vector<1x1x64xf32> to vector<1x64xf32>
    %77 = vector.broadcast %76 : vector<1x64xf32> to vector<12x64xf32>
    %78 = arith.mulf %74, %77 : vector<12x64xf32>
    %79 = arith.addf %71, %78 : vector<12x64xf32>
    %c2_74 = arith.constant 2 : index
    %c0_75 = arith.constant 0 : index
    %c0_76 = arith.constant 0 : index
    %80 = vector.load %arg6[%c2_74, %c0_75, %c0_76] : memref<4x12x32xf32, #tpu.memory_space<vmem>>, vector<1x12x32xf32>
    %81 = vector.shape_cast %80 : vector<1x12x32xf32> to vector<12x32xf32>
    %cst_77 = arith.constant dense<0.000000e+00> : vector<12x64xf32>
    %82 = tpu.matmul %81, %64, %cst_77 {dimension_numbers = #tpu.dot_dimension_numbers<[1], [0], [0], [1], [0, 0, 1, 1], [], []>} : vector<12x32xf32>, vector<32x64xf32>, vector<12x64xf32> -> vector<12x64xf32>
    %c2_78 = arith.constant 2 : index
    %c0_79 = arith.constant 0 : index
    %c0_80 = arith.constant 0 : index
    %83 = vector.load %arg9[%c2_78, %c0_79, %c0_80] : memref<4x1x64xf32, #tpu.memory_space<vmem>>, vector<1x1x64xf32>
    %84 = vector.shape_cast %83 : vector<1x1x64xf32> to vector<1x64xf32>
    %85 = vector.broadcast %84 : vector<1x64xf32> to vector<12x64xf32>
    %86 = arith.mulf %82, %85 : vector<12x64xf32>
    %87 = arith.addf %79, %86 : vector<12x64xf32>
    %c3_81 = arith.constant 3 : index
    %c0_82 = arith.constant 0 : index
    %c0_83 = arith.constant 0 : index
    %88 = vector.load %arg6[%c3_81, %c0_82, %c0_83] : memref<4x12x32xf32, #tpu.memory_space<vmem>>, vector<1x12x32xf32>
    %89 = vector.shape_cast %88 : vector<1x12x32xf32> to vector<12x32xf32>
    %cst_84 = arith.constant dense<0.000000e+00> : vector<12x64xf32>
    %90 = tpu.matmul %89, %64, %cst_84 {dimension_numbers = #tpu.dot_dimension_numbers<[1], [0], [0], [1], [0, 0, 1, 1], [], []>} : vector<12x32xf32>, vector<32x64xf32>, vector<12x64xf32> -> vector<12x64xf32>
    %c3_85 = arith.constant 3 : index
    %c0_86 = arith.constant 0 : index
    %c0_87 = arith.constant 0 : index
    %91 = vector.load %arg9[%c3_85, %c0_86, %c0_87] : memref<4x1x64xf32, #tpu.memory_space<vmem>>, vector<1x1x64xf32>
    %92 = vector.shape_cast %91 : vector<1x1x64xf32> to vector<1x64xf32>
    %93 = vector.broadcast %92 : vector<1x64xf32> to vector<12x64xf32>
    %94 = arith.mulf %90, %93 : vector<12x64xf32>
    %95 = arith.addf %87, %94 : vector<12x64xf32>
    %96 = vector.broadcast %2 : vector<12x1xf32> to vector<12x64xf32>
    %97 = arith.addf %95, %96 : vector<12x64xf32>
    %98 = vector.extract_strided_slice %97 {offsets = [0, 0], sizes = [4, 64], strides = [1, 1]} : vector<12x64xf32> to vector<4x64xf32>
    %c0_88 = arith.constant 0 : index
    %c0_89 = arith.constant 0 : index
    %c1_90 = arith.constant 1 : index
    %c0_91 = arith.constant 0 : index
    %c0_92 = arith.constant 0 : index
    %99 = vector.load %arg10[%c0_88, %c0_89, %c1_90, %c0_91, %c0_92] : memref<1x3x8x4x64xf32, #tpu.memory_space<vmem>>, vector<1x1x1x4x64xf32>
    %100 = vector.shape_cast %99 : vector<1x1x1x4x64xf32> to vector<4x64xf32>
    %101 = vector.shape_cast %98 : vector<4x64xf32> to vector<1x1x1x4x64xf32>
    tpu.vector_store %arg10[%c0_88, %c0_89, %c1_90, %c0_91, %c0_92], %101 {strides = array<i32>} : memref<1x3x8x4x64xf32, #tpu.memory_space<vmem>>, vector<1x1x1x4x64xf32>,
    %102 = vector.extract_strided_slice %97 {offsets = [4, 0], sizes = [4, 64], strides = [1, 1]} : vector<12x64xf32> to vector<4x64xf32>
    %c0_93 = arith.constant 0 : index
    %c1_94 = arith.constant 1 : index
    %c1_95 = arith.constant 1 : index
    %c0_96 = arith.constant 0 : index
    %c0_97 = arith.constant 0 : index
    %103 = vector.load %arg10[%c0_93, %c1_94, %c1_95, %c0_96, %c0_97] : memref<1x3x8x4x64xf32, #tpu.memory_space<vmem>>, vector<1x1x1x4x64xf32>
    %104 = vector.shape_cast %103 : vector<1x1x1x4x64xf32> to vector<4x64xf32>
    %105 = vector.shape_cast %102 : vector<4x64xf32> to vector<1x1x1x4x64xf32>
    tpu.vector_store %arg10[%c0_93, %c1_94, %c1_95, %c0_96, %c0_97], %105 {strides = array<i32>} : memref<1x3x8x4x64xf32, #tpu.memory_space<vmem>>, vector<1x1x1x4x64xf32>,
    %106 = vector.extract_strided_slice %97 {offsets = [8, 0], sizes = [4, 64], strides = [1, 1]} : vector<12x64xf32> to vector<4x64xf32>
    %c0_98 = arith.constant 0 : index
    %c2_99 = arith.constant 2 : index
    %c1_100 = arith.constant 1 : index
    %c0_101 = arith.constant 0 : index
    %c0_102 = arith.constant 0 : index
    %107 = vector.load %arg10[%c0_98, %c2_99, %c1_100, %c0_101, %c0_102] : memref<1x3x8x4x64xf32, #tpu.memory_space<vmem>>, vector<1x1x1x4x64xf32>
    %108 = vector.shape_cast %107 : vector<1x1x1x4x64xf32> to vector<4x64xf32>
    %109 = vector.shape_cast %106 : vector<4x64xf32> to vector<1x1x1x4x64xf32>
    tpu.vector_store %arg10[%c0_98, %c2_99, %c1_100, %c0_101, %c0_102], %109 {strides = array<i32>} : memref<1x3x8x4x64xf32, #tpu.memory_space<vmem>>, vector<1x1x1x4x64xf32>,
    %c0_103 = arith.constant 0 : index
    %c0_104 = arith.constant 0 : index
    %c2_105 = arith.constant 2 : index
    %c0_106 = arith.constant 0 : index
    %110 = vector.load %arg3[%c0_103, %c0_104, %c2_105, %c0_106] : memref<1x4x8x16xf32, #tpu.memory_space<vmem>>, vector<1x4x1x16xf32>
    %111 = vector.shape_cast %110 : vector<1x4x1x16xf32> to vector<4x16xf32>
    %cst_107 = arith.constant dense<0.000000e+00> : vector<4x64xf32>
    %112 = tpu.matmul %111, %3, %cst_107 {dimension_numbers = #tpu.dot_dimension_numbers<[1], [0], [0], [1], [0, 0, 1, 1], [], []>} : vector<4x16xf32>, vector<16x64xf32>, vector<4x64xf32> -> vector<4x64xf32>
    %cst_108 = arith.constant dense<0.000000e+00> : vector<32x64xf32>
    %113 = tpu.matmul %0, %112, %cst_108 {dimension_numbers = #tpu.dot_dimension_numbers<[1], [0], [0], [1], [0, 0, 1, 1], [], []>} : vector<32x4xf32>, vector<4x64xf32>, vector<32x64xf32> -> vector<32x64xf32>
    %114 = vector.broadcast %1 : vector<32x1xf32> to vector<32x64xf32>
    %115 = arith.addf %113, %114 : vector<32x64xf32>
    %cst_109 = arith.constant 0.000000e+00 : f32
    %116 = vector.broadcast %cst_109 : f32 to vector<32x64xf32>
    %117 = arith.maximumf %115, %116 : vector<32x64xf32>
    %c0_110 = arith.constant 0 : index
    %c0_111 = arith.constant 0 : index
    %c0_112 = arith.constant 0 : index
    %118 = vector.load %arg6[%c0_110, %c0_111, %c0_112] : memref<4x12x32xf32, #tpu.memory_space<vmem>>, vector<1x12x32xf32>
    %119 = vector.shape_cast %118 : vector<1x12x32xf32> to vector<12x32xf32>
    %cst_113 = arith.constant dense<0.000000e+00> : vector<12x64xf32>
    %120 = tpu.matmul %119, %117, %cst_113 {dimension_numbers = #tpu.dot_dimension_numbers<[1], [0], [0], [1], [0, 0, 1, 1], [], []>} : vector<12x32xf32>, vector<32x64xf32>, vector<12x64xf32> -> vector<12x64xf32>
    %c0_114 = arith.constant 0 : index
    %c0_115 = arith.constant 0 : index
    %c0_116 = arith.constant 0 : index
    %121 = vector.load %arg9[%c0_114, %c0_115, %c0_116] : memref<4x1x64xf32, #tpu.memory_space<vmem>>, vector<1x1x64xf32>
    %122 = vector.shape_cast %121 : vector<1x1x64xf32> to vector<1x64xf32>
    %123 = vector.broadcast %122 : vector<1x64xf32> to vector<12x64xf32>
    %124 = arith.mulf %120, %123 : vector<12x64xf32>
    %c1_117 = arith.constant 1 : index
    %c0_118 = arith.constant 0 : index
    %c0_119 = arith.constant 0 : index
    %125 = vector.load %arg6[%c1_117, %c0_118, %c0_119] : memref<4x12x32xf32, #tpu.memory_space<vmem>>, vector<1x12x32xf32>
    %126 = vector.shape_cast %125 : vector<1x12x32xf32> to vector<12x32xf32>
    %cst_120 = arith.constant dense<0.000000e+00> : vector<12x64xf32>
    %127 = tpu.matmul %126, %117, %cst_120 {dimension_numbers = #tpu.dot_dimension_numbers<[1], [0], [0], [1], [0, 0, 1, 1], [], []>} : vector<12x32xf32>, vector<32x64xf32>, vector<12x64xf32> -> vector<12x64xf32>
    %c1_121 = arith.constant 1 : index
    %c0_122 = arith.constant 0 : index
    %c0_123 = arith.constant 0 : index
    %128 = vector.load %arg9[%c1_121, %c0_122, %c0_123] : memref<4x1x64xf32, #tpu.memory_space<vmem>>, vector<1x1x64xf32>
    %129 = vector.shape_cast %128 : vector<1x1x64xf32> to vector<1x64xf32>
    %130 = vector.broadcast %129 : vector<1x64xf32> to vector<12x64xf32>
    %131 = arith.mulf %127, %130 : vector<12x64xf32>
    %132 = arith.addf %124, %131 : vector<12x64xf32>
    %c2_124 = arith.constant 2 : index
    %c0_125 = arith.constant 0 : index
    %c0_126 = arith.constant 0 : index
    %133 = vector.load %arg6[%c2_124, %c0_125, %c0_126] : memref<4x12x32xf32, #tpu.memory_space<vmem>>, vector<1x12x32xf32>
    %134 = vector.shape_cast %133 : vector<1x12x32xf32> to vector<12x32xf32>
    %cst_127 = arith.constant dense<0.000000e+00> : vector<12x64xf32>
    %135 = tpu.matmul %134, %117, %cst_127 {dimension_numbers = #tpu.dot_dimension_numbers<[1], [0], [0], [1], [0, 0, 1, 1], [], []>} : vector<12x32xf32>, vector<32x64xf32>, vector<12x64xf32> -> vector<12x64xf32>
    %c2_128 = arith.constant 2 : index
    %c0_129 = arith.constant 0 : index
    %c0_130 = arith.constant 0 : index
    %136 = vector.load %arg9[%c2_128, %c0_129, %c0_130] : memref<4x1x64xf32, #tpu.memory_space<vmem>>, vector<1x1x64xf32>
    %137 = vector.shape_cast %136 : vector<1x1x64xf32> to vector<1x64xf32>
    %138 = vector.broadcast %137 : vector<1x64xf32> to vector<12x64xf32>
    %139 = arith.mulf %135, %138 : vector<12x64xf32>
    %140 = arith.addf %132, %139 : vector<12x64xf32>
    %c3_131 = arith.constant 3 : index
    %c0_132 = arith.constant 0 : index
    %c0_133 = arith.constant 0 : index
    %141 = vector.load %arg6[%c3_131, %c0_132, %c0_133] : memref<4x12x32xf32, #tpu.memory_space<vmem>>, vector<1x12x32xf32>
    %142 = vector.shape_cast %141 : vector<1x12x32xf32> to vector<12x32xf32>
    %cst_134 = arith.constant dense<0.000000e+00> : vector<12x64xf32>
    %143 = tpu.matmul %142, %117, %cst_134 {dimension_numbers = #tpu.dot_dimension_numbers<[1], [0], [0], [1], [0, 0, 1, 1], [], []>} : vector<12x32xf32>, vector<32x64xf32>, vector<12x64xf32> -> vector<12x64xf32>
    %c3_135 = arith.constant 3 : index
    %c0_136 = arith.constant 0 : index
    %c0_137 = arith.constant 0 : index
    %144 = vector.load %arg9[%c3_135, %c0_136, %c0_137] : memref<4x1x64xf32, #tpu.memory_space<vmem>>, vector<1x1x64xf32>
    %145 = vector.shape_cast %144 : vector<1x1x64xf32> to vector<1x64xf32>
    %146 = vector.broadcast %145 : vector<1x64xf32> to vector<12x64xf32>
    %147 = arith.mulf %143, %146 : vector<12x64xf32>
    %148 = arith.addf %140, %147 : vector<12x64xf32>
    %149 = vector.broadcast %2 : vector<12x1xf32> to vector<12x64xf32>
    %150 = arith.addf %148, %149 : vector<12x64xf32>
    %151 = vector.extract_strided_slice %150 {offsets = [0, 0], sizes = [4, 64], strides = [1, 1]} : vector<12x64xf32> to vector<4x64xf32>
    %c0_138 = arith.constant 0 : index
    %c0_139 = arith.constant 0 : index
    %c2_140 = arith.constant 2 : index
    %c0_141 = arith.constant 0 : index
    %c0_142 = arith.constant 0 : index
    %152 = vector.load %arg10[%c0_138, %c0_139, %c2_140, %c0_141, %c0_142] : memref<1x3x8x4x64xf32, #tpu.memory_space<vmem>>, vector<1x1x1x4x64xf32>
    %153 = vector.shape_cast %152 : vector<1x1x1x4x64xf32> to vector<4x64xf32>
    %154 = vector.shape_cast %151 : vector<4x64xf32> to vector<1x1x1x4x64xf32>
    tpu.vector_store %arg10[%c0_138, %c0_139, %c2_140, %c0_141, %c0_142], %154 {strides = array<i32>} : memref<1x3x8x4x64xf32, #tpu.memory_space<vmem>>, vector<1x1x1x4x64xf32>,
    %155 = vector.extract_strided_slice %150 {offsets = [4, 0], sizes = [4, 64], strides = [1, 1]} : vector<12x64xf32> to vector<4x64xf32>
    %c0_143 = arith.constant 0 : index
    %c1_144 = arith.constant 1 : index
    %c2_145 = arith.constant 2 : index
    %c0_146 = arith.constant 0 : index
    %c0_147 = arith.constant 0 : index
    %156 = vector.load %arg10[%c0_143, %c1_144, %c2_145, %c0_146, %c0_147] : memref<1x3x8x4x64xf32, #tpu.memory_space<vmem>>, vector<1x1x1x4x64xf32>
    %157 = vector.shape_cast %156 : vector<1x1x1x4x64xf32> to vector<4x64xf32>
    %158 = vector.shape_cast %155 : vector<4x64xf32> to vector<1x1x1x4x64xf32>
    tpu.vector_store %arg10[%c0_143, %c1_144, %c2_145, %c0_146, %c0_147], %158 {strides = array<i32>} : memref<1x3x8x4x64xf32, #tpu.memory_space<vmem>>, vector<1x1x1x4x64xf32>,
    %159 = vector.extract_strided_slice %150 {offsets = [8, 0], sizes = [4, 64], strides = [1, 1]} : vector<12x64xf32> to vector<4x64xf32>
    %c0_148 = arith.constant 0 : index
    %c2_149 = arith.constant 2 : index
    %c2_150 = arith.constant 2 : index
    %c0_151 = arith.constant 0 : index
    %c0_152 = arith.constant 0 : index
    %160 = vector.load %arg10[%c0_148, %c2_149, %c2_150, %c0_151, %c0_152] : memref<1x3x8x4x64xf32, #tpu.memory_space<vmem>>, vector<1x1x1x4x64xf32>
    %161 = vector.shape_cast %160 : vector<1x1x1x4x64xf32> to vector<4x64xf32>
    %162 = vector.shape_cast %159 : vector<4x64xf32> to vector<1x1x1x4x64xf32>
    tpu.vector_store %arg10[%c0_148, %c2_149, %c2_150, %c0_151, %c0_152], %162 {strides = array<i32>} : memref<1x3x8x4x64xf32, #tpu.memory_space<vmem>>, vector<1x1x1x4x64xf32>,
    %c0_153 = arith.constant 0 : index
    %c0_154 = arith.constant 0 : index
    %c3_155 = arith.constant 3 : index
    %c0_156 = arith.constant 0 : index
    %163 = vector.load %arg3[%c0_153, %c0_154, %c3_155, %c0_156] : memref<1x4x8x16xf32, #tpu.memory_space<vmem>>, vector<1x4x1x16xf32>
    %164 = vector.shape_cast %163 : vector<1x4x1x16xf32> to vector<4x16xf32>
    %cst_157 = arith.constant dense<0.000000e+00> : vector<4x64xf32>
    %165 = tpu.matmul %164, %3, %cst_157 {dimension_numbers = #tpu.dot_dimension_numbers<[1], [0], [0], [1], [0, 0, 1, 1], [], []>} : vector<4x16xf32>, vector<16x64xf32>, vector<4x64xf32> -> vector<4x64xf32>
    %cst_158 = arith.constant dense<0.000000e+00> : vector<32x64xf32>
    %166 = tpu.matmul %0, %165, %cst_158 {dimension_numbers = #tpu.dot_dimension_numbers<[1], [0], [0], [1], [0, 0, 1, 1], [], []>} : vector<32x4xf32>, vector<4x64xf32>, vector<32x64xf32> -> vector<32x64xf32>
    %167 = vector.broadcast %1 : vector<32x1xf32> to vector<32x64xf32>
    %168 = arith.addf %166, %167 : vector<32x64xf32>
    %cst_159 = arith.constant 0.000000e+00 : f32
    %169 = vector.broadcast %cst_159 : f32 to vector<32x64xf32>
    %170 = arith.maximumf %168, %169 : vector<32x64xf32>
    %c0_160 = arith.constant 0 : index
    %c0_161 = arith.constant 0 : index
    %c0_162 = arith.constant 0 : index
    %171 = vector.load %arg6[%c0_160, %c0_161, %c0_162] : memref<4x12x32xf32, #tpu.memory_space<vmem>>, vector<1x12x32xf32>
    %172 = vector.shape_cast %171 : vector<1x12x32xf32> to vector<12x32xf32>
    %cst_163 = arith.constant dense<0.000000e+00> : vector<12x64xf32>
    %173 = tpu.matmul %172, %170, %cst_163 {dimension_numbers = #tpu.dot_dimension_numbers<[1], [0], [0], [1], [0, 0, 1, 1], [], []>} : vector<12x32xf32>, vector<32x64xf32>, vector<12x64xf32> -> vector<12x64xf32>
    %c0_164 = arith.constant 0 : index
    %c0_165 = arith.constant 0 : index
    %c0_166 = arith.constant 0 : index
    %174 = vector.load %arg9[%c0_164, %c0_165, %c0_166] : memref<4x1x64xf32, #tpu.memory_space<vmem>>, vector<1x1x64xf32>
    %175 = vector.shape_cast %174 : vector<1x1x64xf32> to vector<1x64xf32>
    %176 = vector.broadcast %175 : vector<1x64xf32> to vector<12x64xf32>
    %177 = arith.mulf %173, %176 : vector<12x64xf32>
    %c1_167 = arith.constant 1 : index
    %c0_168 = arith.constant 0 : index
    %c0_169 = arith.constant 0 : index
    %178 = vector.load %arg6[%c1_167, %c0_168, %c0_169] : memref<4x12x32xf32, #tpu.memory_space<vmem>>, vector<1x12x32xf32>
    %179 = vector.shape_cast %178 : vector<1x12x32xf32> to vector<12x32xf32>
    %cst_170 = arith.constant dense<0.000000e+00> : vector<12x64xf32>
    %180 = tpu.matmul %179, %170, %cst_170 {dimension_numbers = #tpu.dot_dimension_numbers<[1], [0], [0], [1], [0, 0, 1, 1], [], []>} : vector<12x32xf32>, vector<32x64xf32>, vector<12x64xf32> -> vector<12x64xf32>
    %c1_171 = arith.constant 1 : index
    %c0_172 = arith.constant 0 : index
    %c0_173 = arith.constant 0 : index
    %181 = vector.load %arg9[%c1_171, %c0_172, %c0_173] : memref<4x1x64xf32, #tpu.memory_space<vmem>>, vector<1x1x64xf32>
    %182 = vector.shape_cast %181 : vector<1x1x64xf32> to vector<1x64xf32>
    %183 = vector.broadcast %182 : vector<1x64xf32> to vector<12x64xf32>
    %184 = arith.mulf %180, %183 : vector<12x64xf32>
    %185 = arith.addf %177, %184 : vector<12x64xf32>
    %c2_174 = arith.constant 2 : index
    %c0_175 = arith.constant 0 : index
    %c0_176 = arith.constant 0 : index
    %186 = vector.load %arg6[%c2_174, %c0_175, %c0_176] : memref<4x12x32xf32, #tpu.memory_space<vmem>>, vector<1x12x32xf32>
    %187 = vector.shape_cast %186 : vector<1x12x32xf32> to vector<12x32xf32>
    %cst_177 = arith.constant dense<0.000000e+00> : vector<12x64xf32>
    %188 = tpu.matmul %187, %170, %cst_177 {dimension_numbers = #tpu.dot_dimension_numbers<[1], [0], [0], [1], [0, 0, 1, 1], [], []>} : vector<12x32xf32>, vector<32x64xf32>, vector<12x64xf32> -> vector<12x64xf32>
    %c2_178 = arith.constant 2 : index
    %c0_179 = arith.constant 0 : index
    %c0_180 = arith.constant 0 : index
    %189 = vector.load %arg9[%c2_178, %c0_179, %c0_180] : memref<4x1x64xf32, #tpu.memory_space<vmem>>, vector<1x1x64xf32>
    %190 = vector.shape_cast %189 : vector<1x1x64xf32> to vector<1x64xf32>
    %191 = vector.broadcast %190 : vector<1x64xf32> to vector<12x64xf32>
    %192 = arith.mulf %188, %191 : vector<12x64xf32>
    %193 = arith.addf %185, %192 : vector<12x64xf32>
    %c3_181 = arith.constant 3 : index
    %c0_182 = arith.constant 0 : index
    %c0_183 = arith.constant 0 : index
    %194 = vector.load %arg6[%c3_181, %c0_182, %c0_183] : memref<4x12x32xf32, #tpu.memory_space<vmem>>, vector<1x12x32xf32>
    %195 = vector.shape_cast %194 : vector<1x12x32xf32> to vector<12x32xf32>
    %cst_184 = arith.constant dense<0.000000e+00> : vector<12x64xf32>
    %196 = tpu.matmul %195, %170, %cst_184 {dimension_numbers = #tpu.dot_dimension_numbers<[1], [0], [0], [1], [0, 0, 1, 1], [], []>} : vector<12x32xf32>, vector<32x64xf32>, vector<12x64xf32> -> vector<12x64xf32>
    %c3_185 = arith.constant 3 : index
    %c0_186 = arith.constant 0 : index
    %c0_187 = arith.constant 0 : index
    %197 = vector.load %arg9[%c3_185, %c0_186, %c0_187] : memref<4x1x64xf32, #tpu.memory_space<vmem>>, vector<1x1x64xf32>
    %198 = vector.shape_cast %197 : vector<1x1x64xf32> to vector<1x64xf32>
    %199 = vector.broadcast %198 : vector<1x64xf32> to vector<12x64xf32>
    %200 = arith.mulf %196, %199 : vector<12x64xf32>
    %201 = arith.addf %193, %200 : vector<12x64xf32>
    %202 = vector.broadcast %2 : vector<12x1xf32> to vector<12x64xf32>
    %203 = arith.addf %201, %202 : vector<12x64xf32>
    %204 = vector.extract_strided_slice %203 {offsets = [0, 0], sizes = [4, 64], strides = [1, 1]} : vector<12x64xf32> to vector<4x64xf32>
    %c0_188 = arith.constant 0 : index
    %c0_189 = arith.constant 0 : index
    %c3_190 = arith.constant 3 : index
    %c0_191 = arith.constant 0 : index
    %c0_192 = arith.constant 0 : index
    %205 = vector.load %arg10[%c0_188, %c0_189, %c3_190, %c0_191, %c0_192] : memref<1x3x8x4x64xf32, #tpu.memory_space<vmem>>, vector<1x1x1x4x64xf32>
    %206 = vector.shape_cast %205 : vector<1x1x1x4x64xf32> to vector<4x64xf32>
    %207 = vector.shape_cast %204 : vector<4x64xf32> to vector<1x1x1x4x64xf32>
    tpu.vector_store %arg10[%c0_188, %c0_189, %c3_190, %c0_191, %c0_192], %207 {strides = array<i32>} : memref<1x3x8x4x64xf32, #tpu.memory_space<vmem>>, vector<1x1x1x4x64xf32>,
    %208 = vector.extract_strided_slice %203 {offsets = [4, 0], sizes = [4, 64], strides = [1, 1]} : vector<12x64xf32> to vector<4x64xf32>
    %c0_193 = arith.constant 0 : index
    %c1_194 = arith.constant 1 : index
    %c3_195 = arith.constant 3 : index
    %c0_196 = arith.constant 0 : index
    %c0_197 = arith.constant 0 : index
    %209 = vector.load %arg10[%c0_193, %c1_194, %c3_195, %c0_196, %c0_197] : memref<1x3x8x4x64xf32, #tpu.memory_space<vmem>>, vector<1x1x1x4x64xf32>
    %210 = vector.shape_cast %209 : vector<1x1x1x4x64xf32> to vector<4x64xf32>
    %211 = vector.shape_cast %208 : vector<4x64xf32> to vector<1x1x1x4x64xf32>
    tpu.vector_store %arg10[%c0_193, %c1_194, %c3_195, %c0_196, %c0_197], %211 {strides = array<i32>} : memref<1x3x8x4x64xf32, #tpu.memory_space<vmem>>, vector<1x1x1x4x64xf32>,
    %212 = vector.extract_strided_slice %203 {offsets = [8, 0], sizes = [4, 64], strides = [1, 1]} : vector<12x64xf32> to vector<4x64xf32>
    %c0_198 = arith.constant 0 : index
    %c2_199 = arith.constant 2 : index
    %c3_200 = arith.constant 3 : index
    %c0_201 = arith.constant 0 : index
    %c0_202 = arith.constant 0 : index
    %213 = vector.load %arg10[%c0_198, %c2_199, %c3_200, %c0_201, %c0_202] : memref<1x3x8x4x64xf32, #tpu.memory_space<vmem>>, vector<1x1x1x4x64xf32>
    %214 = vector.shape_cast %213 : vector<1x1x1x4x64xf32> to vector<4x64xf32>
    %215 = vector.shape_cast %212 : vector<4x64xf32> to vector<1x1x1x4x64xf32>
    tpu.vector_store %arg10[%c0_198, %c2_199, %c3_200, %c0_201, %c0_202], %215 {strides = array<i32>} : memref<1x3x8x4x64xf32, #tpu.memory_space<vmem>>, vector<1x1x1x4x64xf32>,
    %c0_203 = arith.constant 0 : index
    %c0_204 = arith.constant 0 : index
    %c4 = arith.constant 4 : index
    %c0_205 = arith.constant 0 : index
    %216 = vector.load %arg3[%c0_203, %c0_204, %c4, %c0_205] : memref<1x4x8x16xf32, #tpu.memory_space<vmem>>, vector<1x4x1x16xf32>
    %217 = vector.shape_cast %216 : vector<1x4x1x16xf32> to vector<4x16xf32>
    %cst_206 = arith.constant dense<0.000000e+00> : vector<4x64xf32>
    %218 = tpu.matmul %217, %3, %cst_206 {dimension_numbers = #tpu.dot_dimension_numbers<[1], [0], [0], [1], [0, 0, 1, 1], [], []>} : vector<4x16xf32>, vector<16x64xf32>, vector<4x64xf32> -> vector<4x64xf32>
    %cst_207 = arith.constant dense<0.000000e+00> : vector<32x64xf32>
    %219 = tpu.matmul %0, %218, %cst_207 {dimension_numbers = #tpu.dot_dimension_numbers<[1], [0], [0], [1], [0, 0, 1, 1], [], []>} : vector<32x4xf32>, vector<4x64xf32>, vector<32x64xf32> -> vector<32x64xf32>
    %220 = vector.broadcast %1 : vector<32x1xf32> to vector<32x64xf32>
    %221 = arith.addf %219, %220 : vector<32x64xf32>
    %cst_208 = arith.constant 0.000000e+00 : f32
    %222 = vector.broadcast %cst_208 : f32 to vector<32x64xf32>
    %223 = arith.maximumf %221, %222 : vector<32x64xf32>
    %c0_209 = arith.constant 0 : index
    %c0_210 = arith.constant 0 : index
    %c0_211 = arith.constant 0 : index
    %224 = vector.load %arg6[%c0_209, %c0_210, %c0_211] : memref<4x12x32xf32, #tpu.memory_space<vmem>>, vector<1x12x32xf32>
    %225 = vector.shape_cast %224 : vector<1x12x32xf32> to vector<12x32xf32>
    %cst_212 = arith.constant dense<0.000000e+00> : vector<12x64xf32>
    %226 = tpu.matmul %225, %223, %cst_212 {dimension_numbers = #tpu.dot_dimension_numbers<[1], [0], [0], [1], [0, 0, 1, 1], [], []>} : vector<12x32xf32>, vector<32x64xf32>, vector<12x64xf32> -> vector<12x64xf32>
    %c0_213 = arith.constant 0 : index
    %c0_214 = arith.constant 0 : index
    %c0_215 = arith.constant 0 : index
    %227 = vector.load %arg9[%c0_213, %c0_214, %c0_215] : memref<4x1x64xf32, #tpu.memory_space<vmem>>, vector<1x1x64xf32>
    %228 = vector.shape_cast %227 : vector<1x1x64xf32> to vector<1x64xf32>
    %229 = vector.broadcast %228 : vector<1x64xf32> to vector<12x64xf32>
    %230 = arith.mulf %226, %229 : vector<12x64xf32>
    %c1_216 = arith.constant 1 : index
    %c0_217 = arith.constant 0 : index
    %c0_218 = arith.constant 0 : index
    %231 = vector.load %arg6[%c1_216, %c0_217, %c0_218] : memref<4x12x32xf32, #tpu.memory_space<vmem>>, vector<1x12x32xf32>
    %232 = vector.shape_cast %231 : vector<1x12x32xf32> to vector<12x32xf32>
    %cst_219 = arith.constant dense<0.000000e+00> : vector<12x64xf32>
    %233 = tpu.matmul %232, %223, %cst_219 {dimension_numbers = #tpu.dot_dimension_numbers<[1], [0], [0], [1], [0, 0, 1, 1], [], []>} : vector<12x32xf32>, vector<32x64xf32>, vector<12x64xf32> -> vector<12x64xf32>
    %c1_220 = arith.constant 1 : index
    %c0_221 = arith.constant 0 : index
    %c0_222 = arith.constant 0 : index
    %234 = vector.load %arg9[%c1_220, %c0_221, %c0_222] : memref<4x1x64xf32, #tpu.memory_space<vmem>>, vector<1x1x64xf32>
    %235 = vector.shape_cast %234 : vector<1x1x64xf32> to vector<1x64xf32>
    %236 = vector.broadcast %235 : vector<1x64xf32> to vector<12x64xf32>
    %237 = arith.mulf %233, %236 : vector<12x64xf32>
    %238 = arith.addf %230, %237 : vector<12x64xf32>
    %c2_223 = arith.constant 2 : index
    %c0_224 = arith.constant 0 : index
    %c0_225 = arith.constant 0 : index
    %239 = vector.load %arg6[%c2_223, %c0_224, %c0_225] : memref<4x12x32xf32, #tpu.memory_space<vmem>>, vector<1x12x32xf32>
    %240 = vector.shape_cast %239 : vector<1x12x32xf32> to vector<12x32xf32>
    %cst_226 = arith.constant dense<0.000000e+00> : vector<12x64xf32>
    %241 = tpu.matmul %240, %223, %cst_226 {dimension_numbers = #tpu.dot_dimension_numbers<[1], [0], [0], [1], [0, 0, 1, 1], [], []>} : vector<12x32xf32>, vector<32x64xf32>, vector<12x64xf32> -> vector<12x64xf32>
    %c2_227 = arith.constant 2 : index
    %c0_228 = arith.constant 0 : index
    %c0_229 = arith.constant 0 : index
    %242 = vector.load %arg9[%c2_227, %c0_228, %c0_229] : memref<4x1x64xf32, #tpu.memory_space<vmem>>, vector<1x1x64xf32>
    %243 = vector.shape_cast %242 : vector<1x1x64xf32> to vector<1x64xf32>
    %244 = vector.broadcast %243 : vector<1x64xf32> to vector<12x64xf32>
    %245 = arith.mulf %241, %244 : vector<12x64xf32>
    %246 = arith.addf %238, %245 : vector<12x64xf32>
    %c3_230 = arith.constant 3 : index
    %c0_231 = arith.constant 0 : index
    %c0_232 = arith.constant 0 : index
    %247 = vector.load %arg6[%c3_230, %c0_231, %c0_232] : memref<4x12x32xf32, #tpu.memory_space<vmem>>, vector<1x12x32xf32>
    %248 = vector.shape_cast %247 : vector<1x12x32xf32> to vector<12x32xf32>
    %cst_233 = arith.constant dense<0.000000e+00> : vector<12x64xf32>
    %249 = tpu.matmul %248, %223, %cst_233 {dimension_numbers = #tpu.dot_dimension_numbers<[1], [0], [0], [1], [0, 0, 1, 1], [], []>} : vector<12x32xf32>, vector<32x64xf32>, vector<12x64xf32> -> vector<12x64xf32>
    %c3_234 = arith.constant 3 : index
    %c0_235 = arith.constant 0 : index
    %c0_236 = arith.constant 0 : index
    %250 = vector.load %arg9[%c3_234, %c0_235, %c0_236] : memref<4x1x64xf32, #tpu.memory_space<vmem>>, vector<1x1x64xf32>
    %251 = vector.shape_cast %250 : vector<1x1x64xf32> to vector<1x64xf32>
    %252 = vector.broadcast %251 : vector<1x64xf32> to vector<12x64xf32>
    %253 = arith.mulf %249, %252 : vector<12x64xf32>
    %254 = arith.addf %246, %253 : vector<12x64xf32>
    %255 = vector.broadcast %2 : vector<12x1xf32> to vector<12x64xf32>
    %256 = arith.addf %254, %255 : vector<12x64xf32>
    %257 = vector.extract_strided_slice %256 {offsets = [0, 0], sizes = [4, 64], strides = [1, 1]} : vector<12x64xf32> to vector<4x64xf32>
    %c0_237 = arith.constant 0 : index
    %c0_238 = arith.constant 0 : index
    %c4_239 = arith.constant 4 : index
    %c0_240 = arith.constant 0 : index
    %c0_241 = arith.constant 0 : index
    %258 = vector.load %arg10[%c0_237, %c0_238, %c4_239, %c0_240, %c0_241] : memref<1x3x8x4x64xf32, #tpu.memory_space<vmem>>, vector<1x1x1x4x64xf32>
    %259 = vector.shape_cast %258 : vector<1x1x1x4x64xf32> to vector<4x64xf32>
    %260 = vector.shape_cast %257 : vector<4x64xf32> to vector<1x1x1x4x64xf32>
    tpu.vector_store %arg10[%c0_237, %c0_238, %c4_239, %c0_240, %c0_241], %260 {strides = array<i32>} : memref<1x3x8x4x64xf32, #tpu.memory_space<vmem>>, vector<1x1x1x4x64xf32>,
    %261 = vector.extract_strided_slice %256 {offsets = [4, 0], sizes = [4, 64], strides = [1, 1]} : vector<12x64xf32> to vector<4x64xf32>
    %c0_242 = arith.constant 0 : index
    %c1_243 = arith.constant 1 : index
    %c4_244 = arith.constant 4 : index
    %c0_245 = arith.constant 0 : index
    %c0_246 = arith.constant 0 : index
    %262 = vector.load %arg10[%c0_242, %c1_243, %c4_244, %c0_245, %c0_246] : memref<1x3x8x4x64xf32, #tpu.memory_space<vmem>>, vector<1x1x1x4x64xf32>
    %263 = vector.shape_cast %262 : vector<1x1x1x4x64xf32> to vector<4x64xf32>
    %264 = vector.shape_cast %261 : vector<4x64xf32> to vector<1x1x1x4x64xf32>
    tpu.vector_store %arg10[%c0_242, %c1_243, %c4_244, %c0_245, %c0_246], %264 {strides = array<i32>} : memref<1x3x8x4x64xf32, #tpu.memory_space<vmem>>, vector<1x1x1x4x64xf32>,
    %265 = vector.extract_strided_slice %256 {offsets = [8, 0], sizes = [4, 64], strides = [1, 1]} : vector<12x64xf32> to vector<4x64xf32>
    %c0_247 = arith.constant 0 : index
    %c2_248 = arith.constant 2 : index
    %c4_249 = arith.constant 4 : index
    %c0_250 = arith.constant 0 : index
    %c0_251 = arith.constant 0 : index
    %266 = vector.load %arg10[%c0_247, %c2_248, %c4_249, %c0_250, %c0_251] : memref<1x3x8x4x64xf32, #tpu.memory_space<vmem>>, vector<1x1x1x4x64xf32>
    %267 = vector.shape_cast %266 : vector<1x1x1x4x64xf32> to vector<4x64xf32>
    %268 = vector.shape_cast %265 : vector<4x64xf32> to vector<1x1x1x4x64xf32>
    tpu.vector_store %arg10[%c0_247, %c2_248, %c4_249, %c0_250, %c0_251], %268 {strides = array<i32>} : memref<1x3x8x4x64xf32, #tpu.memory_space<vmem>>, vector<1x1x1x4x64xf32>,
    %c0_252 = arith.constant 0 : index
    %c0_253 = arith.constant 0 : index
    %c5 = arith.constant 5 : index
    %c0_254 = arith.constant 0 : index
    %269 = vector.load %arg3[%c0_252, %c0_253, %c5, %c0_254] : memref<1x4x8x16xf32, #tpu.memory_space<vmem>>, vector<1x4x1x16xf32>
    %270 = vector.shape_cast %269 : vector<1x4x1x16xf32> to vector<4x16xf32>
    %cst_255 = arith.constant dense<0.000000e+00> : vector<4x64xf32>
    %271 = tpu.matmul %270, %3, %cst_255 {dimension_numbers = #tpu.dot_dimension_numbers<[1], [0], [0], [1], [0, 0, 1, 1], [], []>} : vector<4x16xf32>, vector<16x64xf32>, vector<4x64xf32> -> vector<4x64xf32>
    %cst_256 = arith.constant dense<0.000000e+00> : vector<32x64xf32>
    %272 = tpu.matmul %0, %271, %cst_256 {dimension_numbers = #tpu.dot_dimension_numbers<[1], [0], [0], [1], [0, 0, 1, 1], [], []>} : vector<32x4xf32>, vector<4x64xf32>, vector<32x64xf32> -> vector<32x64xf32>
    %273 = vector.broadcast %1 : vector<32x1xf32> to vector<32x64xf32>
    %274 = arith.addf %272, %273 : vector<32x64xf32>
    %cst_257 = arith.constant 0.000000e+00 : f32
    %275 = vector.broadcast %cst_257 : f32 to vector<32x64xf32>
    %276 = arith.maximumf %274, %275 : vector<32x64xf32>
    %c0_258 = arith.constant 0 : index
    %c0_259 = arith.constant 0 : index
    %c0_260 = arith.constant 0 : index
    %277 = vector.load %arg6[%c0_258, %c0_259, %c0_260] : memref<4x12x32xf32, #tpu.memory_space<vmem>>, vector<1x12x32xf32>
    %278 = vector.shape_cast %277 : vector<1x12x32xf32> to vector<12x32xf32>
    %cst_261 = arith.constant dense<0.000000e+00> : vector<12x64xf32>
    %279 = tpu.matmul %278, %276, %cst_261 {dimension_numbers = #tpu.dot_dimension_numbers<[1], [0], [0], [1], [0, 0, 1, 1], [], []>} : vector<12x32xf32>, vector<32x64xf32>, vector<12x64xf32> -> vector<12x64xf32>
    %c0_262 = arith.constant 0 : index
    %c0_263 = arith.constant 0 : index
    %c0_264 = arith.constant 0 : index
    %280 = vector.load %arg9[%c0_262, %c0_263, %c0_264] : memref<4x1x64xf32, #tpu.memory_space<vmem>>, vector<1x1x64xf32>
    %281 = vector.shape_cast %280 : vector<1x1x64xf32> to vector<1x64xf32>
    %282 = vector.broadcast %281 : vector<1x64xf32> to vector<12x64xf32>
    %283 = arith.mulf %279, %282 : vector<12x64xf32>
    %c1_265 = arith.constant 1 : index
    %c0_266 = arith.constant 0 : index
    %c0_267 = arith.constant 0 : index
    %284 = vector.load %arg6[%c1_265, %c0_266, %c0_267] : memref<4x12x32xf32, #tpu.memory_space<vmem>>, vector<1x12x32xf32>
    %285 = vector.shape_cast %284 : vector<1x12x32xf32> to vector<12x32xf32>
    %cst_268 = arith.constant dense<0.000000e+00> : vector<12x64xf32>
    %286 = tpu.matmul %285, %276, %cst_268 {dimension_numbers = #tpu.dot_dimension_numbers<[1], [0], [0], [1], [0, 0, 1, 1], [], []>} : vector<12x32xf32>, vector<32x64xf32>, vector<12x64xf32> -> vector<12x64xf32>
    %c1_269 = arith.constant 1 : index
    %c0_270 = arith.constant 0 : index
    %c0_271 = arith.constant 0 : index
    %287 = vector.load %arg9[%c1_269, %c0_270, %c0_271] : memref<4x1x64xf32, #tpu.memory_space<vmem>>, vector<1x1x64xf32>
    %288 = vector.shape_cast %287 : vector<1x1x64xf32> to vector<1x64xf32>
    %289 = vector.broadcast %288 : vector<1x64xf32> to vector<12x64xf32>
    %290 = arith.mulf %286, %289 : vector<12x64xf32>
    %291 = arith.addf %283, %290 : vector<12x64xf32>
    %c2_272 = arith.constant 2 : index
    %c0_273 = arith.constant 0 : index
    %c0_274 = arith.constant 0 : index
    %292 = vector.load %arg6[%c2_272, %c0_273, %c0_274] : memref<4x12x32xf32, #tpu.memory_space<vmem>>, vector<1x12x32xf32>
    %293 = vector.shape_cast %292 : vector<1x12x32xf32> to vector<12x32xf32>
    %cst_275 = arith.constant dense<0.000000e+00> : vector<12x64xf32>
    %294 = tpu.matmul %293, %276, %cst_275 {dimension_numbers = #tpu.dot_dimension_numbers<[1], [0], [0], [1], [0, 0, 1, 1], [], []>} : vector<12x32xf32>, vector<32x64xf32>, vector<12x64xf32> -> vector<12x64xf32>
    %c2_276 = arith.constant 2 : index
    %c0_277 = arith.constant 0 : index
    %c0_278 = arith.constant 0 : index
    %295 = vector.load %arg9[%c2_276, %c0_277, %c0_278] : memref<4x1x64xf32, #tpu.memory_space<vmem>>, vector<1x1x64xf32>
    %296 = vector.shape_cast %295 : vector<1x1x64xf32> to vector<1x64xf32>
    %297 = vector.broadcast %296 : vector<1x64xf32> to vector<12x64xf32>
    %298 = arith.mulf %294, %297 : vector<12x64xf32>
    %299 = arith.addf %291, %298 : vector<12x64xf32>
    %c3_279 = arith.constant 3 : index
    %c0_280 = arith.constant 0 : index
    %c0_281 = arith.constant 0 : index
    %300 = vector.load %arg6[%c3_279, %c0_280, %c0_281] : memref<4x12x32xf32, #tpu.memory_space<vmem>>, vector<1x12x32xf32>
    %301 = vector.shape_cast %300 : vector<1x12x32xf32> to vector<12x32xf32>
    %cst_282 = arith.constant dense<0.000000e+00> : vector<12x64xf32>
    %302 = tpu.matmul %301, %276, %cst_282 {dimension_numbers = #tpu.dot_dimension_numbers<[1], [0], [0], [1], [0, 0, 1, 1], [], []>} : vector<12x32xf32>, vector<32x64xf32>, vector<12x64xf32> -> vector<12x64xf32>
    %c3_283 = arith.constant 3 : index
    %c0_284 = arith.constant 0 : index
    %c0_285 = arith.constant 0 : index
    %303 = vector.load %arg9[%c3_283, %c0_284, %c0_285] : memref<4x1x64xf32, #tpu.memory_space<vmem>>, vector<1x1x64xf32>
    %304 = vector.shape_cast %303 : vector<1x1x64xf32> to vector<1x64xf32>
    %305 = vector.broadcast %304 : vector<1x64xf32> to vector<12x64xf32>
    %306 = arith.mulf %302, %305 : vector<12x64xf32>
    %307 = arith.addf %299, %306 : vector<12x64xf32>
    %308 = vector.broadcast %2 : vector<12x1xf32> to vector<12x64xf32>
    %309 = arith.addf %307, %308 : vector<12x64xf32>
    %310 = vector.extract_strided_slice %309 {offsets = [0, 0], sizes = [4, 64], strides = [1, 1]} : vector<12x64xf32> to vector<4x64xf32>
    %c0_286 = arith.constant 0 : index
    %c0_287 = arith.constant 0 : index
    %c5_288 = arith.constant 5 : index
    %c0_289 = arith.constant 0 : index
    %c0_290 = arith.constant 0 : index
    %311 = vector.load %arg10[%c0_286, %c0_287, %c5_288, %c0_289, %c0_290] : memref<1x3x8x4x64xf32, #tpu.memory_space<vmem>>, vector<1x1x1x4x64xf32>
    %312 = vector.shape_cast %311 : vector<1x1x1x4x64xf32> to vector<4x64xf32>
    %313 = vector.shape_cast %310 : vector<4x64xf32> to vector<1x1x1x4x64xf32>
    tpu.vector_store %arg10[%c0_286, %c0_287, %c5_288, %c0_289, %c0_290], %313 {strides = array<i32>} : memref<1x3x8x4x64xf32, #tpu.memory_space<vmem>>, vector<1x1x1x4x64xf32>,
    %314 = vector.extract_strided_slice %309 {offsets = [4, 0], sizes = [4, 64], strides = [1, 1]} : vector<12x64xf32> to vector<4x64xf32>
    %c0_291 = arith.constant 0 : index
    %c1_292 = arith.constant 1 : index
    %c5_293 = arith.constant 5 : index
    %c0_294 = arith.constant 0 : index
    %c0_295 = arith.constant 0 : index
    %315 = vector.load %arg10[%c0_291, %c1_292, %c5_293, %c0_294, %c0_295] : memref<1x3x8x4x64xf32, #tpu.memory_space<vmem>>, vector<1x1x1x4x64xf32>
    %316 = vector.shape_cast %315 : vector<1x1x1x4x64xf32> to vector<4x64xf32>
    %317 = vector.shape_cast %314 : vector<4x64xf32> to vector<1x1x1x4x64xf32>
    tpu.vector_store %arg10[%c0_291, %c1_292, %c5_293, %c0_294, %c0_295], %317 {strides = array<i32>} : memref<1x3x8x4x64xf32, #tpu.memory_space<vmem>>, vector<1x1x1x4x64xf32>,
    %318 = vector.extract_strided_slice %309 {offsets = [8, 0], sizes = [4, 64], strides = [1, 1]} : vector<12x64xf32> to vector<4x64xf32>
    %c0_296 = arith.constant 0 : index
    %c2_297 = arith.constant 2 : index
    %c5_298 = arith.constant 5 : index
    %c0_299 = arith.constant 0 : index
    %c0_300 = arith.constant 0 : index
    %319 = vector.load %arg10[%c0_296, %c2_297, %c5_298, %c0_299, %c0_300] : memref<1x3x8x4x64xf32, #tpu.memory_space<vmem>>, vector<1x1x1x4x64xf32>
    %320 = vector.shape_cast %319 : vector<1x1x1x4x64xf32> to vector<4x64xf32>
    %321 = vector.shape_cast %318 : vector<4x64xf32> to vector<1x1x1x4x64xf32>
    tpu.vector_store %arg10[%c0_296, %c2_297, %c5_298, %c0_299, %c0_300], %321 {strides = array<i32>} : memref<1x3x8x4x64xf32, #tpu.memory_space<vmem>>, vector<1x1x1x4x64xf32>,
    %c0_301 = arith.constant 0 : index
    %c0_302 = arith.constant 0 : index
    %c6 = arith.constant 6 : index
    %c0_303 = arith.constant 0 : index
    %322 = vector.load %arg3[%c0_301, %c0_302, %c6, %c0_303] : memref<1x4x8x16xf32, #tpu.memory_space<vmem>>, vector<1x4x1x16xf32>
    %323 = vector.shape_cast %322 : vector<1x4x1x16xf32> to vector<4x16xf32>
    %cst_304 = arith.constant dense<0.000000e+00> : vector<4x64xf32>
    %324 = tpu.matmul %323, %3, %cst_304 {dimension_numbers = #tpu.dot_dimension_numbers<[1], [0], [0], [1], [0, 0, 1, 1], [], []>} : vector<4x16xf32>, vector<16x64xf32>, vector<4x64xf32> -> vector<4x64xf32>
    %cst_305 = arith.constant dense<0.000000e+00> : vector<32x64xf32>
    %325 = tpu.matmul %0, %324, %cst_305 {dimension_numbers = #tpu.dot_dimension_numbers<[1], [0], [0], [1], [0, 0, 1, 1], [], []>} : vector<32x4xf32>, vector<4x64xf32>, vector<32x64xf32> -> vector<32x64xf32>
    %326 = vector.broadcast %1 : vector<32x1xf32> to vector<32x64xf32>
    %327 = arith.addf %325, %326 : vector<32x64xf32>
    %cst_306 = arith.constant 0.000000e+00 : f32
    %328 = vector.broadcast %cst_306 : f32 to vector<32x64xf32>
    %329 = arith.maximumf %327, %328 : vector<32x64xf32>
    %c0_307 = arith.constant 0 : index
    %c0_308 = arith.constant 0 : index
    %c0_309 = arith.constant 0 : index
    %330 = vector.load %arg6[%c0_307, %c0_308, %c0_309] : memref<4x12x32xf32, #tpu.memory_space<vmem>>, vector<1x12x32xf32>
    %331 = vector.shape_cast %330 : vector<1x12x32xf32> to vector<12x32xf32>
    %cst_310 = arith.constant dense<0.000000e+00> : vector<12x64xf32>
    %332 = tpu.matmul %331, %329, %cst_310 {dimension_numbers = #tpu.dot_dimension_numbers<[1], [0], [0], [1], [0, 0, 1, 1], [], []>} : vector<12x32xf32>, vector<32x64xf32>, vector<12x64xf32> -> vector<12x64xf32>
    %c0_311 = arith.constant 0 : index
    %c0_312 = arith.constant 0 : index
    %c0_313 = arith.constant 0 : index
    %333 = vector.load %arg9[%c0_311, %c0_312, %c0_313] : memref<4x1x64xf32, #tpu.memory_space<vmem>>, vector<1x1x64xf32>
    %334 = vector.shape_cast %333 : vector<1x1x64xf32> to vector<1x64xf32>
    %335 = vector.broadcast %334 : vector<1x64xf32> to vector<12x64xf32>
    %336 = arith.mulf %332, %335 : vector<12x64xf32>
    %c1_314 = arith.constant 1 : index
    %c0_315 = arith.constant 0 : index
    %c0_316 = arith.constant 0 : index
    %337 = vector.load %arg6[%c1_314, %c0_315, %c0_316] : memref<4x12x32xf32, #tpu.memory_space<vmem>>, vector<1x12x32xf32>
    %338 = vector.shape_cast %337 : vector<1x12x32xf32> to vector<12x32xf32>
    %cst_317 = arith.constant dense<0.000000e+00> : vector<12x64xf32>
    %339 = tpu.matmul %338, %329, %cst_317 {dimension_numbers = #tpu.dot_dimension_numbers<[1], [0], [0], [1], [0, 0, 1, 1], [], []>} : vector<12x32xf32>, vector<32x64xf32>, vector<12x64xf32> -> vector<12x64xf32>
    %c1_318 = arith.constant 1 : index
    %c0_319 = arith.constant 0 : index
    %c0_320 = arith.constant 0 : index
    %340 = vector.load %arg9[%c1_318, %c0_319, %c0_320] : memref<4x1x64xf32, #tpu.memory_space<vmem>>, vector<1x1x64xf32>
    %341 = vector.shape_cast %340 : vector<1x1x64xf32> to vector<1x64xf32>
    %342 = vector.broadcast %341 : vector<1x64xf32> to vector<12x64xf32>
    %343 = arith.mulf %339, %342 : vector<12x64xf32>
    %344 = arith.addf %336, %343 : vector<12x64xf32>
    %c2_321 = arith.constant 2 : index
    %c0_322 = arith.constant 0 : index
    %c0_323 = arith.constant 0 : index
    %345 = vector.load %arg6[%c2_321, %c0_322, %c0_323] : memref<4x12x32xf32, #tpu.memory_space<vmem>>, vector<1x12x32xf32>
    %346 = vector.shape_cast %345 : vector<1x12x32xf32> to vector<12x32xf32>
    %cst_324 = arith.constant dense<0.000000e+00> : vector<12x64xf32>
    %347 = tpu.matmul %346, %329, %cst_324 {dimension_numbers = #tpu.dot_dimension_numbers<[1], [0], [0], [1], [0, 0, 1, 1], [], []>} : vector<12x32xf32>, vector<32x64xf32>, vector<12x64xf32> -> vector<12x64xf32>
    %c2_325 = arith.constant 2 : index
    %c0_326 = arith.constant 0 : index
    %c0_327 = arith.constant 0 : index
    %348 = vector.load %arg9[%c2_325, %c0_326, %c0_327] : memref<4x1x64xf32, #tpu.memory_space<vmem>>, vector<1x1x64xf32>
    %349 = vector.shape_cast %348 : vector<1x1x64xf32> to vector<1x64xf32>
    %350 = vector.broadcast %349 : vector<1x64xf32> to vector<12x64xf32>
    %351 = arith.mulf %347, %350 : vector<12x64xf32>
    %352 = arith.addf %344, %351 : vector<12x64xf32>
    %c3_328 = arith.constant 3 : index
    %c0_329 = arith.constant 0 : index
    %c0_330 = arith.constant 0 : index
    %353 = vector.load %arg6[%c3_328, %c0_329, %c0_330] : memref<4x12x32xf32, #tpu.memory_space<vmem>>, vector<1x12x32xf32>
    %354 = vector.shape_cast %353 : vector<1x12x32xf32> to vector<12x32xf32>
    %cst_331 = arith.constant dense<0.000000e+00> : vector<12x64xf32>
    %355 = tpu.matmul %354, %329, %cst_331 {dimension_numbers = #tpu.dot_dimension_numbers<[1], [0], [0], [1], [0, 0, 1, 1], [], []>} : vector<12x32xf32>, vector<32x64xf32>, vector<12x64xf32> -> vector<12x64xf32>
    %c3_332 = arith.constant 3 : index
    %c0_333 = arith.constant 0 : index
    %c0_334 = arith.constant 0 : index
    %356 = vector.load %arg9[%c3_332, %c0_333, %c0_334] : memref<4x1x64xf32, #tpu.memory_space<vmem>>, vector<1x1x64xf32>
    %357 = vector.shape_cast %356 : vector<1x1x64xf32> to vector<1x64xf32>
    %358 = vector.broadcast %357 : vector<1x64xf32> to vector<12x64xf32>
    %359 = arith.mulf %355, %358 : vector<12x64xf32>
    %360 = arith.addf %352, %359 : vector<12x64xf32>
    %361 = vector.broadcast %2 : vector<12x1xf32> to vector<12x64xf32>
    %362 = arith.addf %360, %361 : vector<12x64xf32>
    %363 = vector.extract_strided_slice %362 {offsets = [0, 0], sizes = [4, 64], strides = [1, 1]} : vector<12x64xf32> to vector<4x64xf32>
    %c0_335 = arith.constant 0 : index
    %c0_336 = arith.constant 0 : index
    %c6_337 = arith.constant 6 : index
    %c0_338 = arith.constant 0 : index
    %c0_339 = arith.constant 0 : index
    %364 = vector.load %arg10[%c0_335, %c0_336, %c6_337, %c0_338, %c0_339] : memref<1x3x8x4x64xf32, #tpu.memory_space<vmem>>, vector<1x1x1x4x64xf32>
    %365 = vector.shape_cast %364 : vector<1x1x1x4x64xf32> to vector<4x64xf32>
    %366 = vector.shape_cast %363 : vector<4x64xf32> to vector<1x1x1x4x64xf32>
    tpu.vector_store %arg10[%c0_335, %c0_336, %c6_337, %c0_338, %c0_339], %366 {strides = array<i32>} : memref<1x3x8x4x64xf32, #tpu.memory_space<vmem>>, vector<1x1x1x4x64xf32>,
    %367 = vector.extract_strided_slice %362 {offsets = [4, 0], sizes = [4, 64], strides = [1, 1]} : vector<12x64xf32> to vector<4x64xf32>
    %c0_340 = arith.constant 0 : index
    %c1_341 = arith.constant 1 : index
    %c6_342 = arith.constant 6 : index
    %c0_343 = arith.constant 0 : index
    %c0_344 = arith.constant 0 : index
    %368 = vector.load %arg10[%c0_340, %c1_341, %c6_342, %c0_343, %c0_344] : memref<1x3x8x4x64xf32, #tpu.memory_space<vmem>>, vector<1x1x1x4x64xf32>
    %369 = vector.shape_cast %368 : vector<1x1x1x4x64xf32> to vector<4x64xf32>
    %370 = vector.shape_cast %367 : vector<4x64xf32> to vector<1x1x1x4x64xf32>
    tpu.vector_store %arg10[%c0_340, %c1_341, %c6_342, %c0_343, %c0_344], %370 {strides = array<i32>} : memref<1x3x8x4x64xf32, #tpu.memory_space<vmem>>, vector<1x1x1x4x64xf32>,
    %371 = vector.extract_strided_slice %362 {offsets = [8, 0], sizes = [4, 64], strides = [1, 1]} : vector<12x64xf32> to vector<4x64xf32>
    %c0_345 = arith.constant 0 : index
    %c2_346 = arith.constant 2 : index
    %c6_347 = arith.constant 6 : index
    %c0_348 = arith.constant 0 : index
    %c0_349 = arith.constant 0 : index
    %372 = vector.load %arg10[%c0_345, %c2_346, %c6_347, %c0_348, %c0_349] : memref<1x3x8x4x64xf32, #tpu.memory_space<vmem>>, vector<1x1x1x4x64xf32>
    %373 = vector.shape_cast %372 : vector<1x1x1x4x64xf32> to vector<4x64xf32>
    %374 = vector.shape_cast %371 : vector<4x64xf32> to vector<1x1x1x4x64xf32>
    tpu.vector_store %arg10[%c0_345, %c2_346, %c6_347, %c0_348, %c0_349], %374 {strides = array<i32>} : memref<1x3x8x4x64xf32, #tpu.memory_space<vmem>>, vector<1x1x1x4x64xf32>,
    %c0_350 = arith.constant 0 : index
    %c0_351 = arith.constant 0 : index
    %c7 = arith.constant 7 : index
    %c0_352 = arith.constant 0 : index
    %375 = vector.load %arg3[%c0_350, %c0_351, %c7, %c0_352] : memref<1x4x8x16xf32, #tpu.memory_space<vmem>>, vector<1x4x1x16xf32>
    %376 = vector.shape_cast %375 : vector<1x4x1x16xf32> to vector<4x16xf32>
    %cst_353 = arith.constant dense<0.000000e+00> : vector<4x64xf32>
    %377 = tpu.matmul %376, %3, %cst_353 {dimension_numbers = #tpu.dot_dimension_numbers<[1], [0], [0], [1], [0, 0, 1, 1], [], []>} : vector<4x16xf32>, vector<16x64xf32>, vector<4x64xf32> -> vector<4x64xf32>
    %cst_354 = arith.constant dense<0.000000e+00> : vector<32x64xf32>
    %378 = tpu.matmul %0, %377, %cst_354 {dimension_numbers = #tpu.dot_dimension_numbers<[1], [0], [0], [1], [0, 0, 1, 1], [], []>} : vector<32x4xf32>, vector<4x64xf32>, vector<32x64xf32> -> vector<32x64xf32>
    %379 = vector.broadcast %1 : vector<32x1xf32> to vector<32x64xf32>
    %380 = arith.addf %378, %379 : vector<32x64xf32>
    %cst_355 = arith.constant 0.000000e+00 : f32
    %381 = vector.broadcast %cst_355 : f32 to vector<32x64xf32>
    %382 = arith.maximumf %380, %381 : vector<32x64xf32>
    %c0_356 = arith.constant 0 : index
    %c0_357 = arith.constant 0 : index
    %c0_358 = arith.constant 0 : index
    %383 = vector.load %arg6[%c0_356, %c0_357, %c0_358] : memref<4x12x32xf32, #tpu.memory_space<vmem>>, vector<1x12x32xf32>
    %384 = vector.shape_cast %383 : vector<1x12x32xf32> to vector<12x32xf32>
    %cst_359 = arith.constant dense<0.000000e+00> : vector<12x64xf32>
    %385 = tpu.matmul %384, %382, %cst_359 {dimension_numbers = #tpu.dot_dimension_numbers<[1], [0], [0], [1], [0, 0, 1, 1], [], []>} : vector<12x32xf32>, vector<32x64xf32>, vector<12x64xf32> -> vector<12x64xf32>
    %c0_360 = arith.constant 0 : index
    %c0_361 = arith.constant 0 : index
    %c0_362 = arith.constant 0 : index
    %386 = vector.load %arg9[%c0_360, %c0_361, %c0_362] : memref<4x1x64xf32, #tpu.memory_space<vmem>>, vector<1x1x64xf32>
    %387 = vector.shape_cast %386 : vector<1x1x64xf32> to vector<1x64xf32>
    %388 = vector.broadcast %387 : vector<1x64xf32> to vector<12x64xf32>
    %389 = arith.mulf %385, %388 : vector<12x64xf32>
    %c1_363 = arith.constant 1 : index
    %c0_364 = arith.constant 0 : index
    %c0_365 = arith.constant 0 : index
    %390 = vector.load %arg6[%c1_363, %c0_364, %c0_365] : memref<4x12x32xf32, #tpu.memory_space<vmem>>, vector<1x12x32xf32>
    %391 = vector.shape_cast %390 : vector<1x12x32xf32> to vector<12x32xf32>
    %cst_366 = arith.constant dense<0.000000e+00> : vector<12x64xf32>
    %392 = tpu.matmul %391, %382, %cst_366 {dimension_numbers = #tpu.dot_dimension_numbers<[1], [0], [0], [1], [0, 0, 1, 1], [], []>} : vector<12x32xf32>, vector<32x64xf32>, vector<12x64xf32> -> vector<12x64xf32>
    %c1_367 = arith.constant 1 : index
    %c0_368 = arith.constant 0 : index
    %c0_369 = arith.constant 0 : index
    %393 = vector.load %arg9[%c1_367, %c0_368, %c0_369] : memref<4x1x64xf32, #tpu.memory_space<vmem>>, vector<1x1x64xf32>
    %394 = vector.shape_cast %393 : vector<1x1x64xf32> to vector<1x64xf32>
    %395 = vector.broadcast %394 : vector<1x64xf32> to vector<12x64xf32>
    %396 = arith.mulf %392, %395 : vector<12x64xf32>
    %397 = arith.addf %389, %396 : vector<12x64xf32>
    %c2_370 = arith.constant 2 : index
    %c0_371 = arith.constant 0 : index
    %c0_372 = arith.constant 0 : index
    %398 = vector.load %arg6[%c2_370, %c0_371, %c0_372] : memref<4x12x32xf32, #tpu.memory_space<vmem>>, vector<1x12x32xf32>
    %399 = vector.shape_cast %398 : vector<1x12x32xf32> to vector<12x32xf32>
    %cst_373 = arith.constant dense<0.000000e+00> : vector<12x64xf32>
    %400 = tpu.matmul %399, %382, %cst_373 {dimension_numbers = #tpu.dot_dimension_numbers<[1], [0], [0], [1], [0, 0, 1, 1], [], []>} : vector<12x32xf32>, vector<32x64xf32>, vector<12x64xf32> -> vector<12x64xf32>
    %c2_374 = arith.constant 2 : index
    %c0_375 = arith.constant 0 : index
    %c0_376 = arith.constant 0 : index
    %401 = vector.load %arg9[%c2_374, %c0_375, %c0_376] : memref<4x1x64xf32, #tpu.memory_space<vmem>>, vector<1x1x64xf32>
    %402 = vector.shape_cast %401 : vector<1x1x64xf32> to vector<1x64xf32>
    %403 = vector.broadcast %402 : vector<1x64xf32> to vector<12x64xf32>
    %404 = arith.mulf %400, %403 : vector<12x64xf32>
    %405 = arith.addf %397, %404 : vector<12x64xf32>
    %c3_377 = arith.constant 3 : index
    %c0_378 = arith.constant 0 : index
    %c0_379 = arith.constant 0 : index
    %406 = vector.load %arg6[%c3_377, %c0_378, %c0_379] : memref<4x12x32xf32, #tpu.memory_space<vmem>>, vector<1x12x32xf32>
    %407 = vector.shape_cast %406 : vector<1x12x32xf32> to vector<12x32xf32>
    %cst_380 = arith.constant dense<0.000000e+00> : vector<12x64xf32>
    %408 = tpu.matmul %407, %382, %cst_380 {dimension_numbers = #tpu.dot_dimension_numbers<[1], [0], [0], [1], [0, 0, 1, 1], [], []>} : vector<12x32xf32>, vector<32x64xf32>, vector<12x64xf32> -> vector<12x64xf32>
    %c3_381 = arith.constant 3 : index
    %c0_382 = arith.constant 0 : index
    %c0_383 = arith.constant 0 : index
    %409 = vector.load %arg9[%c3_381, %c0_382, %c0_383] : memref<4x1x64xf32, #tpu.memory_space<vmem>>, vector<1x1x64xf32>
    %410 = vector.shape_cast %409 : vector<1x1x64xf32> to vector<1x64xf32>
    %411 = vector.broadcast %410 : vector<1x64xf32> to vector<12x64xf32>
    %412 = arith.mulf %408, %411 : vector<12x64xf32>
    %413 = arith.addf %405, %412 : vector<12x64xf32>
    %414 = vector.broadcast %2 : vector<12x1xf32> to vector<12x64xf32>
    %415 = arith.addf %413, %414 : vector<12x64xf32>
    %416 = vector.extract_strided_slice %415 {offsets = [0, 0], sizes = [4, 64], strides = [1, 1]} : vector<12x64xf32> to vector<4x64xf32>
    %c0_384 = arith.constant 0 : index
    %c0_385 = arith.constant 0 : index
    %c7_386 = arith.constant 7 : index
    %c0_387 = arith.constant 0 : index
    %c0_388 = arith.constant 0 : index
    %417 = vector.load %arg10[%c0_384, %c0_385, %c7_386, %c0_387, %c0_388] : memref<1x3x8x4x64xf32, #tpu.memory_space<vmem>>, vector<1x1x1x4x64xf32>
    %418 = vector.shape_cast %417 : vector<1x1x1x4x64xf32> to vector<4x64xf32>
    %419 = vector.shape_cast %416 : vector<4x64xf32> to vector<1x1x1x4x64xf32>
    tpu.vector_store %arg10[%c0_384, %c0_385, %c7_386, %c0_387, %c0_388], %419 {strides = array<i32>} : memref<1x3x8x4x64xf32, #tpu.memory_space<vmem>>, vector<1x1x1x4x64xf32>,
    %420 = vector.extract_strided_slice %415 {offsets = [4, 0], sizes = [4, 64], strides = [1, 1]} : vector<12x64xf32> to vector<4x64xf32>
    %c0_389 = arith.constant 0 : index
    %c1_390 = arith.constant 1 : index
    %c7_391 = arith.constant 7 : index
    %c0_392 = arith.constant 0 : index
    %c0_393 = arith.constant 0 : index
    %421 = vector.load %arg10[%c0_389, %c1_390, %c7_391, %c0_392, %c0_393] : memref<1x3x8x4x64xf32, #tpu.memory_space<vmem>>, vector<1x1x1x4x64xf32>
    %422 = vector.shape_cast %421 : vector<1x1x1x4x64xf32> to vector<4x64xf32>
    %423 = vector.shape_cast %420 : vector<4x64xf32> to vector<1x1x1x4x64xf32>
    tpu.vector_store %arg10[%c0_389, %c1_390, %c7_391, %c0_392, %c0_393], %423 {strides = array<i32>} : memref<1x3x8x4x64xf32, #tpu.memory_space<vmem>>, vector<1x1x1x4x64xf32>,
    %424 = vector.extract_strided_slice %415 {offsets = [8, 0], sizes = [4, 64], strides = [1, 1]} : vector<12x64xf32> to vector<4x64xf32>
    %c0_394 = arith.constant 0 : index
    %c2_395 = arith.constant 2 : index
    %c7_396 = arith.constant 7 : index
    %c0_397 = arith.constant 0 : index
    %c0_398 = arith.constant 0 : index
    %425 = vector.load %arg10[%c0_394, %c2_395, %c7_396, %c0_397, %c0_398] : memref<1x3x8x4x64xf32, #tpu.memory_space<vmem>>, vector<1x1x1x4x64xf32>
    %426 = vector.shape_cast %425 : vector<1x1x1x4x64xf32> to vector<4x64xf32>
    %427 = vector.shape_cast %424 : vector<4x64xf32> to vector<1x1x1x4x64xf32>
    tpu.vector_store %arg10[%c0_394, %c2_395, %c7_396, %c0_397, %c0_398], %427 {strides = array<i32>} : memref<1x3x8x4x64xf32, #tpu.memory_space<vmem>>, vector<1x1x1x4x64xf32>,
    return
  }
  func.func @transform_0(%arg0: i32, %arg1: i32, %arg2: i32) -> (i32, i32, i32, i32) {
    %c0_i32 = arith.constant 0 : i32
    %c0_i32_0 = arith.constant 0 : i32
    return %arg0, %c0_i32, %arg1, %arg2 : i32, i32, i32, i32
  }
  func.func @transform_1(%arg0: i32, %arg1: i32, %arg2: i32) -> (i32, i32) {
    %c0_i32 = arith.constant 0 : i32
    %c0_i32_0 = arith.constant 0 : i32
    %c0_i32_1 = arith.constant 0 : i32
    return %c0_i32, %c0_i32_0 : i32, i32
  }
  func.func @transform_2(%arg0: i32, %arg1: i32, %arg2: i32) -> (i32, i32) {
    %c0_i32 = arith.constant 0 : i32
    %c0_i32_0 = arith.constant 0 : i32
    %c0_i32_1 = arith.constant 0 : i32
    return %c0_i32, %c0_i32_0 : i32, i32
  }
  func.func @transform_3(%arg0: i32, %arg1: i32, %arg2: i32) -> (i32, i32, i32) {
    %c0_i32 = arith.constant 0 : i32
    %c0_i32_0 = arith.constant 0 : i32
    %c0_i32_1 = arith.constant 0 : i32
    %c0_i32_2 = arith.constant 0 : i32
    return %c0_i32, %c0_i32_0, %c0_i32_1 : i32, i32, i32
  }
  func.func @transform_4(%arg0: i32, %arg1: i32, %arg2: i32) -> (i32, i32) {
    %c0_i32 = arith.constant 0 : i32
    %c0_i32_0 = arith.constant 0 : i32
    %c0_i32_1 = arith.constant 0 : i32
    return %c0_i32, %c0_i32_0 : i32, i32
  }
  func.func @transform_5(%arg0: i32, %arg1: i32, %arg2: i32) -> (i32, i32) {
    %c0_i32 = arith.constant 0 : i32
    %c0_i32_0 = arith.constant 0 : i32
    %c0_i32_1 = arith.constant 0 : i32
    return %c0_i32, %c0_i32_0 : i32, i32
  }
  func.func @transform_6(%arg0: i32, %arg1: i32, %arg2: i32) -> (i32, i32, i32) {
    %c0_i32 = arith.constant 0 : i32
    %c0_i32_0 = arith.constant 0 : i32
    %c0_i32_1 = arith.constant 0 : i32
    %c0_i32_2 = arith.constant 0 : i32
    return %c0_i32, %c0_i32_0, %c0_i32_1 : i32, i32, i32
  }
  func.func @transform_7(%arg0: i32, %arg1: i32, %arg2: i32) -> (i32, i32, i32, i32, i32) {
    %c0_i32 = arith.constant 0 : i32
    %c0_i32_0 = arith.constant 0 : i32
    %c0_i32_1 = arith.constant 0 : i32
    return %arg0, %c0_i32, %arg1, %c0_i32_0, %arg2 : i32, i32, i32, i32, i32
  }
}

</mosaic_0001>

<bundles_post_ra>
// kernel: tile.6
= control target key start
LH: loop header
LB: loop body
LE: loop exit
PB: predicated region body
PF: predicated region fallthrough
CT: control target
= control target key end

     0   :  { %s22_s0 = inlined_call_operand.vmem [shape: f32[8], index: 0, kind: input, shape index: {}]   ;;  %s23_s1 = inlined_call_operand.vmem [shape: f32[4,8], index: 1, kind: output, shape index: {}]  }
   0x1   :  { %v4_v0 = vld [vmem:[%s22_s0] ss:$0 sm:$0xff] }
   0x2   :  { %5 = vst [vmem:[%s23_s1] sm:$0xf] %v4_v0 }

// kernel: tile.0
= control target key start
LH: loop header
LB: loop body
LE: loop exit
PB: predicated region body
PF: predicated region fallthrough
CT: control target
= control target key end

     0   :  { %s66_s8 = smov 125   ;;  %vm7_vm0 = vcmask 7168   ;;  %s67_s11 = smov 126   ;;  %s117_s0 = inlined_call_operand.vmem [shape: f32[4,8], index: 0, kind: input, shape index: {}]   ;;  %s118_s1 = inlined_call_operand.vmem [shape: f32[32,1], index: 1, kind: output, shape index: {}]  }
   0x1   :  { %v4_v0 = vld [vmem:[%s117_s0] sm:$0xf]  ;;  %s65_s0 = smov 127   ;;  %s68_s12 = smov 124  }
   0x2   :  { %5 = vst [vmem:[#allocation0] sm:$0xf] %v4_v0  ;;  %s69_s13 = smov 123   ;;  %s70_s14 = smov 122  }
   0x3   :  { %s71_s15 = smov 121  }
   0x9   :  { %v9_v1 = vld [vmem:[#allocation0] sm:$0xf]  }
   0xa   :  { %v21_v2 = vld [vmem:[#allocation0] sm:$0xf]   ;;  %10 = vrot.lane.b32.xlu0 %v9_v1, %s65_s0 }
   0xb   :  { %22 = vrot.lane.b32.xlu1 %v21_v2, %s66_s8  ;;  %v15_v3 = vld [vmem:[#allocation0] sm:$0xf]  }
   0xc   :  { %v27_v4 = vld [vmem:[#allocation0] sm:$0xf]  }
   0xd   :  { %v6_v5 = vld [vmem:[#allocation0] sm:$0xf]  }
   0xe   :  { %8 = vst.msk [vmem:[%s118_s1] ss:$8 sm:$0xf] %vm7_vm0, %v6_v5   ;;  %16 = vrot.lane.b32.xlu0 %v15_v3, %s67_s11  ;;  %v33_v6 = vld [vmem:[#allocation0] sm:$0xf]  }
   0xf   :  { %28 = vrot.lane.b32.xlu1 %v27_v4, %s68_s12  ;;  %v39_v7 = vld [vmem:[#allocation0] sm:$0xf]  }
  0x10   :  { %v45_v8 = vld [vmem:[#allocation0] sm:$0xf]  }
  0x12   :  { %34 = vrot.lane.b32.xlu0 %v33_v6, %s69_s13 }
  0x13   :  { %40 = vrot.lane.b32.xlu1 %v39_v7, %s70_s14 }
  0x16   :  { %46 = vrot.lane.b32.xlu0 %v45_v8, %s71_s15 }
  0x7c   :  { %v11_v9 = vpop.permute.xlu0 %10  }
  0x7d   :  { %v23_v10 = vpop.permute.xlu1 %22   ;;  %51 = vst.msk [vmem:[%s118_s1 + $0x1] ss:$8 sm:$0xf] %vm7_vm0, %v11_v9  }
  0x7e   :  { %53 = vst.msk [vmem:[%s118_s1 + $0x3] ss:$8 sm:$0xf] %vm7_vm0, %v23_v10  }
  0x80   :  { %v17_v11 = vpop.permute.xlu0 %16  }
  0x81   :  { %v29_v12 = vpop.permute.xlu1 %28   ;;  %52 = vst.msk [vmem:[%s118_s1 + $0x2] ss:$8 sm:$0xf] %vm7_vm0, %v17_v11  }
  0x82   :  { %54 = vst.msk [vmem:[%s118_s1 + $0x4] ss:$8 sm:$0xf] %vm7_vm0, %v29_v12  }
  0x84   :  { %v35_v13 = vpop.permute.xlu0 %34  }
  0x85   :  { %v41_v14 = vpop.permute.xlu1 %40   ;;  %55 = vst.msk [vmem:[%s118_s1 + $0x5] ss:$8 sm:$0xf] %vm7_vm0, %v35_v13  }
  0x86   :  { %56 = vst.msk [vmem:[%s118_s1 + $0x6] ss:$8 sm:$0xf] %vm7_vm0, %v41_v14  }
  0x88   :  { %v47_v15 = vpop.permute.xlu0 %46  }
  0x89   :  { %57 = vst.msk [vmem:[%s118_s1 + $0x7] ss:$8 sm:$0xf] %vm7_vm0, %v47_v15  }

// kernel: a_call__.1
= control target key start
LH: loop header
LB: loop body
LE: loop exit
PB: predicated region body
PF: predicated region fallthrough
CT: control target
= control target key end

     0   :  { %s7337_s0 = inlined_call_operand.vmem [shape: f32[2,4,16,16], index: 0, kind: input, shape index: {}]   ;;  %s7338_s1 = inlined_call_operand.vmem [shape: f32[32,4], index: 1, kind: input, shape index: {}]   ;;  %s7339_s2 = inlined_call_operand.vmem [shape: f32[32,1], index: 2, kind: input, shape index: {}]   ;;  %s7340_s3 = inlined_call_operand.vmem [shape: f32[4,12,32], index: 3, kind: input, shape index: {}]   ;;  %s7341_s4 = inlined_call_operand.vmem [shape: f32[12,1], index: 4, kind: input, shape index: {}]   ;;  %s7342_s5 = inlined_call_operand.vmem [shape: f32[16,64], index: 5, kind: input, shape index: {}]   ;;  %s7343_s6 = inlined_call_operand.vmem [shape: f32[4,1,64], index: 6, kind: input, shape index: {}]   ;;  %s7344_s7 = inlined_call_operand.hbm [shape: f32[2,3,16,4,64], index: 7, kind: output, shape index: {}]  }
   0x1   :  { %7346 = sst [smem:[#allocation9_spill]] %s7337_s0 }
   0x2   :  { %7347 = sst [smem:[#allocation10_spill]] %s7338_s1 }
   0x3   :  { %12 = vsyncpa [#allocation4], 0 }
   0x4   :  { %14 = vsyncpa [#allocation4 + $0x1], 0  ;;  %s6512_s24 = smov 0   ;;  %s6514_s25 = smov 0  }
   0x5   :  { %s6516_s26 = smov 0   ;;  %s6518_s27 = smov 0  }
   0x6   :  { %s6520_s28 = smov 0   ;;  %s6522_s29 = smov 0  }
   0x7   :  { %s6524_s30 = smov 0   ;;  %s6526_s8 = smov 0  }
   0x8 LB: > { %s5037_s9 = sadd.s32 4294967295, %s6459_s8   ;;  %s5038_s10 = sadd.s32 4294967294, %s6459_s8   ;;  %s6459_s8 = sphi %s6526_s8, %s20_s8   ;;  %s6455_s30 = sphi %s6524_s30, %s7361_s30   ;;  %s6451_s29 = sphi %s6522_s29, %s7360_s29   ;;  %s6447_s28 = sphi %s6520_s28, %s7359_s28   ;;  %s6443_s27 = sphi %s6518_s27, %s7358_s27   ;;  %s6439_s26 = sphi %s6516_s26, %s7357_s26   ;;  %s6435_s25 = sphi %s6514_s25, %s7356_s25   ;;  %s6431_s24 = sphi %s6512_s24, %s7355_s24  }
   0x9   : > { %s35_s11 = sadd.s32 1, %s6451_s29  ;;  %s39_s12 = sadd.s32 1, %s6455_s30 }
   0xa   : > { %p37_p0 = scmp.ge.s32.totalorder %s35_s11, 2  ;;  %p57_p1 = scmp.ne.s32.totalorder %s6439_s26, %s6435_s25 }
   0xb   : > { %p58_p2 = scmp.eq.s32.totalorder %s6459_s8, 0  ;;  %p217_p5 = scmp.eq.s32.totalorder %s5037_s9, 3 }
   0xc   : > { %s7363_s11 = smov (%p37_p0, %s35_s11), 0  ;;  %s7365_s12 = smov (!%p37_p0, %s39_s12), %s6455_s30 }
   0xd   : > { %s44_s13 = ssub.s32 %s6451_s29, %s7363_s11  ;;  %p6564_p3 = por %p58_p2, %p57_p1 }
   0xe   : > { %p41_p4 = scmp.ge.s32.totalorder %s7365_s12, 2  ;;  %p222_p6 = scmp.ne.s32.totalorder %s6435_s25, %s6431_s24 }
   0xf   : > { %p223_p7 = scmp.eq.s32.totalorder %s5038_s10, 3  ;;  %p6572_p8 = por %p217_p5, %p57_p1 }
  0x10   : > { %s7367_s12 = smov (%p41_p4, %s7365_s12), 0  ;;  %s50_s19 = sadd.s32 1, %s6439_s26 }
  0x11   : > { %7349 = sst [smem:[#allocation8_spill]] %s7367_s12  ;;  %p6576_p9 = por %p223_p7, %p222_p6 }
  0x12   : > { %s43_s17 = ssub.s32 %s6455_s30, %s7367_s12  ;;  %p5040_p11 = scmp.ge.s32.totalorder %s6459_s8, 4 }
  0x13   : > { %s45_s18 = sor.u32 %s44_s13, %s43_s17 }
  0x14   : > { %p48_p10 = scmp.eq.s32.totalorder %s45_s18, 0  ;;  %257 = sbr.rel (%p5040_p11) target bundleno = 39 (0x27), region = 40 }
  0x16   : > { %s6584_s20 = scalar_select %p48_p10, %s6439_s26, %s50_s19  }
  0x1b   : > { %260 = sbr.rel (!%p6564_p3) target bundleno = 39 (0x27), region = 44  ;;  %s262_s21 = sand.u32 (%p6564_p3), 1, %s6439_s26  }
  0x1c   : > { %s5042_s22 = sshll.u32 (%p6564_p3), %s6455_s30, 3  ;;  %s5041_s23 = sshll.u32 (%p6564_p3), %s262_s21, 5 }
  0x1d   : > { %s267_s9 = sadd.s32 (%p6564_p3), %s6451_s29, %s5042_s22  ;;  %s7352_s0 = sld [smem:[#allocation9_spill]] (%p6564_p3) }
  0x1e   : > { %s5043_s10 = sshll.u32 (%p6564_p3), %s267_s9, 3  ;;  %s264_s18 = scalar_lea.vmem (%p6564_p3), [#allocation2], %s5041_s23 }
  0x23   : > { %s269_s17 = scalar_lea.vmem %s7352_s0, %s5043_s10 }
  0x24   : > { %v303_v0 = vld [vmem:[%s269_s17] sm:$0xff]  ;;  %v305_v1 = vld [vmem:[%s269_s17 + $0x10] sm:$0xff] }
  0x25   : > { %v307_v2 = vld [vmem:[%s269_s17 + $0x20] sm:$0xff]  ;;  %304 = vst [vmem:[%s264_s18] sm:$0xff] %v303_v0  ;;  %306 = vst [vmem:[%s264_s18 + $0x8] sm:$0xff] %v305_v1  ;;  %v309_v3 = vld [vmem:[%s269_s17 + $0x30] sm:$0xff] }
  0x26   : > { %308 = vst [vmem:[%s264_s18 + $0x10] sm:$0xff] %v307_v2  ;;  %310 = vst [vmem:[%s264_s18 + $0x18] sm:$0xff] %v309_v3 }
  0x27 PF: > { %p5044_p12 = scmp.ge.s32.totalorder %s6459_s8, 1  ;;  %p315_p13 = scmp.lt.s32.totalorder %s6459_s8, 5 }
  0x29   : > { %p316_p0 = pnand %p5044_p12, %p315_p13 }
  0x2a   : > { %v364_v4 = vld [vmem:[%s7342_s5] sm:$0xff] (!%p316_p0)  ;;  %v365_v5 = vld [vmem:[%s7342_s5 + $0x8] sm:$0xff] (!%p316_p0)  ;;  %s6604_s22 = sand.u32 (!%p316_p0), 1, %s6435_s25   ;;  %v6461_v6 = vmov (!%p316_p0), 0.0|0.0   ;;  %vm6462_vm0 = vmmov (!%p316_p0), 0   ;;  %v6463_v8 = vmov (!%p316_p0), 0.0  }
  0x2b   : > { %319 = sbr.rel (%p316_p0) target bundleno = 3905 (0xf41), region = 82  ;;  %6017 = vmatprep.subr.bf16.mxu0 (!%p316_p0), %v6461_v6  ;;  %v6607_v7 = vpack.c.bf16 (!%p316_p0), %v365_v5, %v364_v4  ;;  %5549 = vmatprep.mubr.msk.f32.mxu0 (!%p316_p0), %vm6462_vm0, %v6463_v8  ;;  %s5045_s23 = sshll.u32 (!%p316_p0), %s6604_s22, 5  ;;  %vm375_vm1 = vcmask (!%p316_p0), 1041409   ;;  %vm378_vm2 = vcmask (!%p316_p0), 1042434   ;;  %vm381_vm3 = vcmask (!%p316_p0), 1043459   ;;  %v358_v20 = vld [vmem:[%s7339_s2] sm:$0xff] (!%p316_p0) }
  0x2c   : > { %s6613_s9 = scalar_lea.vmem (!%p316_p0), [#allocation2], %s5045_s23  ;;  %vm383_vm4 = vcmask (!%p316_p0), 130048   ;;  %s7353_s1 = sld [smem:[#allocation10_spill]] (!%p316_p0)  ;;  %vm476_vm5 = vcmask (!%p316_p0), 31744   ;;  %v360_v21 = vld [vmem:[%s7339_s2 + $0x10] sm:$0xff] (!%p316_p0)  ;;  %v6464_v22 = vmov (!%p316_p0), 0  }
  0x2d   : > { %6019 = vmatpush3.bf16.msra.mxu0 (!%p316_p0), %v6607_v7  ;;  %v366_v9 = vld [vmem:[%s6613_s9] sm:$0x1] (!%p316_p0)  ;;  %v367_v10 = vld [vmem:[%s6613_s9 + $0x8] sm:$0x1] (!%p316_p0)  ;;  %v368_v11 = vld [vmem:[%s6613_s9 + $0x10] sm:$0x1] (!%p316_p0)  ;;  %6387 = vset.pattern.permute.xlu0 (!%p316_p0), %v6464_v22 }
  0x2e   : > { %v369_v12 = vld [vmem:[%s6613_s9 + $0x18] sm:$0x1] (!%p316_p0)  ;;  %v374_v13 = vrot.slane (!%p316_p0), %v367_v10, 7  ;;  %v377_v14 = vrot.slane (!%p316_p0), %v368_v11, 6  ;;  %6388 = vset.pattern.permute.xlu1 (!%p316_p0), %v6464_v22  ;;  %458 = vperm.xlu0 (!%p316_p0), %6387, %v358_v20   ;;  %v359_v23 = vld [vmem:[%s7339_s2 + $0x8] sm:$0xff] (!%p316_p0)  ;;  %v362_v25 = vld [vmem:[%s7341_s4] sm:$0xff] (!%p316_p0) }
  0x2f   : > { %v380_v15 = vrot.slane (!%p316_p0), %v369_v12, 5  ;;  %468 = vperm.xlu1 (!%p316_p0), %6388, %v360_v21   ;;  %v361_v24 = vld [vmem:[%s7339_s2 + $0x18] sm:$0xff] (!%p316_p0)  ;;  %v363_v26 = vld [vmem:[%s7341_s4 + $0x8] sm:$0xf] (!%p316_p0)  ;;  %vm489_vm6 = vcmask (!%p316_p0), 1043456   ;;  %v6674_v32 = vld [vmem:[%s7340_s3] sm:$0xff] (!%p316_p0) }
  0x30   : > { %v376_v16 = vsel (!%p316_p0), %vm375_vm1, %v374_v13, %v366_v9  ;;  %vm584_vm7 = vcmask (!%p316_p0), 261120   ;;  %v6679_v33 = vld [vmem:[%s7340_s3 + $0x10] sm:$0xff] (!%p316_p0)  ;;  %v983_v52 = vld [vmem:[%s6613_s9 + $0x9] sm:$0x1] (!%p316_p0)  ;;  %v5056_v54 = vld [vmem:[%s7340_s3 + $0x18] sm:$0xf] (!%p316_p0) }
  0x31   : > { %v379_v17 = vsel (!%p316_p0), %vm378_vm2, %v377_v14, %v376_v16  ;;  %v583_v53 = vld [vmem:[%s7340_s3 + $0x8] sm:$0xf] (!%p316_p0)  ;;  %v984_v55 = vld [vmem:[%s6613_s9 + $0x11] sm:$0x1] (!%p316_p0)  ;;  %v990_v56 = vrot.slane (!%p316_p0), %v983_v52, 7  ;;  %v6710_v57 = vld [vmem:[%s7340_s3 + $0x20] sm:$0xff] (!%p316_p0) }
  0x32   : > { %v382_v18 = vsel %vm381_vm3, %v380_v15, %v379_v17  ;;  %v6626_v19 = vld [vmem:[%s7353_s1] sm:$0xff]  ;;  %463 = vperm.xlu0 %6387, %v359_v23   ;;  %v6651_v28 = vld [vmem:[%s7353_s1 + $0x8] sm:$0xff]  ;;  %v6657_v30 = vld [vmem:[%s7353_s1 + $0x10] sm:$0xff]  ;;  %v992_v61 = vrot.slane %v984_v55, 6  ;;  %s6297_s23 = smul.u32 96, %s6604_s22  ;;  %vm975_vm8 = vcmask 519168  }
  0x33   : > { %5550 = vmatmul.mubr.msk.f32.vlgmr.msra.gmra.mrb[0].mxu0 %vm383_vm4, %v382_v18  ;;  %5554 = vmatprep.mubr.msk.f32.mxu1 %vm476_vm5, %v6626_v19  ;;  %v6667_v31 = vld [vmem:[%s7353_s1 + $0x18] sm:$0xff]  ;;  %v6715_v58 = vld [vmem:[%s7340_s3 + $0x30] sm:$0xff]  ;;  %v982_v59 = vld [vmem:[%s6613_s9 + $0x1] sm:$0x1]  ;;  %vm978_vm9 = vcmask 523268   ;;  %s4903_s21 = scalar_lea.sflag [#allocation4], %s6604_s22 }
  0x34   : > { %473 = vperm.xlu1 %6388, %v361_v24   ;;  %5579 = vmatprep.mubr.msk.f32.mxu0 %vm584_vm7, %v6679_v33  ;;  %v985_v60 = vld [vmem:[%s6613_s9 + $0x19] sm:$0x1]  ;;  %v991_v62 = vsel %vm375_vm1, %v990_v56, %v982_v59  ;;  %v5062_v63 = vld [vmem:[%s7340_s3 + $0x28] sm:$0xf]  ;;  %v6746_v4 = vld [vmem:[%s7343_s6] ss:$0 sm:$0xff] }
  0x35   : > { %v5068_v0 = vld [vmem:[%s7340_s3 + $0x38] sm:$0xf]  ;;  %v994_v1 = vrot.slane %v985_v60, 5  ;;  %v993_v2 = vsel %vm378_vm2, %v992_v61, %v991_v62  ;;  %v6751_v5 = vld [vmem:[%s7343_s6 + $0x1] ss:$0 sm:$0xff]  ;;  %s6784_s10 = scalar_lea.vmem [#allocation3], %s6297_s23 }
  0x36   : > { %965 = vperm.xlu0 %6387, %v362_v25   ;;  %v6760_v20 = vld [vmem:[%s7343_s6 + $0x2] ss:$0 sm:$0xff]  ;;  %v6765_v21 = vld [vmem:[%s7343_s6 + $0x3] ss:$0 sm:$0xff] }
  0x37   : > { %v995_v3 = vsel %vm381_vm3, %v994_v1, %v993_v2  ;;  %v1543_v1 = vld [vmem:[%s6613_s9 + $0xa] sm:$0x1] }
  0x38   : > { %970 = vperm.xlu1 %6388, %v363_v26   ;;  %v1161_v2 = vld [vmem:[%s7340_s3 + $0x8] sm:$0xf] }
  0xad   : > { %v6685_v34 = vpop.permute.xlu0 %458 }
  0xae   : > { %v6687_v35 = vpop.permute.xlu1 %468 }
  0xb1   : > { %v6689_v36 = vpop.permute.xlu0 %463 }
  0xb3   : > { %v6693_v42 = vpop.permute.xlu1 %473 }
 0x106   : > { %v452_v27 = vpop.f32.mrb[0].mxu0 }
 0x107   : > { %v5551_v29 = vpop.f32.mrb[1].mxu0  ;;  %5552 = vmatprep.subr.msk.mxu1 %vm489_vm6, %v452_v27 }
 0x108   : > { %5553 = vmatpush3.msk.msra.mxu1 %vm489_vm6, %v452_v27 }
 0x109   : > { %5555 = vmatmul.mubr.msk.f32.vlgmr.msra.gmra.mrb[0].mxu1 %vm476_vm5, %v6651_v28 }
 0x10a   : > { %5557 = vmatprep.mubr.msk.f32.mxu1 %vm476_vm5, %v6657_v30 }
 0x10d   : > { %5558 = vmatmul.mubr.msk.f32.gmra.mrb[2].mxu1 %vm476_vm5, %v6667_v31 }
 0x10e   : > { %5568 = vmatprep.mubr.msk.f32.mxu1 %vm584_vm7, %v6674_v32 }
 0x1dc   : > { %v5556_v37 = vpop.f32.mrb[0].mxu1 }
 0x1dd   : > { %v565_v38 = vadd.f32 %v5556_v37, %v6689_v36  ;;  %v559_v39 = vpop.f32.mrb[1].mxu1 }
 0x1de   : > { %v560_v40 = vadd.f32 %v559_v39, %v6685_v34 }
 0x1df   : > { %v579_v41 = vmax.f32 %v565_v38, 0.0 }
 0x1e0   : > { %v578_v43 = vmax.f32 %v560_v40, 0.0  ;;  %v5559_v44 = vpop.f32.mrb[2].mxu1 }
 0x1e1   : > { %v575_v45 = vadd.f32 %v5559_v44, %v6693_v42  ;;  %v569_v46 = vpop.f32.mrb[3].mxu1  ;;  %v6773_v44 = vpop.permute.xlu1 %970 }
 0x1e2   : > { %v6020_v47 = vpack.c.bf16 %v579_v41, %v578_v43  ;;  %v570_v48 = vadd.f32 %v569_v46, %v6687_v35  ;;  %v6776_v46 = vpop.permute.xlu0 %965 }
 0x1e3   : > { %v581_v49 = vmax.f32 %v575_v45, 0.0 }
 0x1e4   : > { %v580_v50 = vmax.f32 %v570_v48, 0.0  ;;  %6021 = vmatprep.subr.bf16.mxu1 %v6020_v47  ;;  %6029 = vmatprep.subr.bf16.mxu0 %v6020_v47 }
 0x1e5   : > { %6023 = vmatpush3.bf16.msra.mxu1 %v6020_v47  ;;  %6031 = vmatpush3.bf16.msra.mxu0 %v6020_v47 }
 0x1e6   : > { %v6024_v51 = vpack.c.bf16 %v581_v49, %v580_v50 }
 0x1e8   : > { %6025 = vmatprep.subr.bf16.mxu1 %v6024_v51  ;;  %6033 = vmatprep.subr.bf16.mxu0 %v6024_v51 }
 0x1e9   : > { %6027 = vmatpush3.bf16.msra.mxu1 %v6024_v51  ;;  %6035 = vmatpush3.bf16.msra.mxu0 %v6024_v51 }
 0x1ea   : > { %6037 = vmatprep.subr.bf16.mxu1 %v6020_v47  ;;  %6045 = vmatprep.subr.bf16.mxu0 %v6020_v47 }
 0x1ec   : > { %5569 = vmatmul.mubr.msk.f32.vlgmr.msra.gmra.mrb[4].mxu1 %vm584_vm7, %v583_v53  ;;  %5580 = vmatmul.mubr.msk.f32.vlgmr.msra.gmra.mrb[2].mxu0 %vm584_vm7, %v5056_v54 }
 0x1ed   : > { %6039 = vmatpush3.bf16.msra.mxu1 %v6020_v47  ;;  %6047 = vmatpush3.bf16.msra.mxu0 %v6020_v47 }
 0x1ee   : > { %6041 = vmatprep.subr.bf16.mxu1 %v6024_v51  ;;  %6049 = vmatprep.subr.bf16.mxu0 %v6024_v51 }
 0x1ef   : > { %5590 = vmatprep.mubr.msk.f32.mxu1 %vm584_vm7, %v6710_v57  ;;  %5601 = vmatprep.mubr.msk.f32.mxu0 %vm584_vm7, %v6715_v58 }
 0x1f1   : > { %6043 = vmatpush3.bf16.msra.mxu1 %v6024_v51  ;;  %6051 = vmatpush3.bf16.msra.mxu0 %v6024_v51 }
 0x1f2   : > { %6052 = vmatprep.subr.bf16.mxu1 %v6461_v6 }
 0x1f4   : > { %5591 = vmatmul.mubr.msk.f32.vlgmr.msra.gmra.mrb[6].mxu1 %vm584_vm7, %v5062_v63  ;;  %5602 = vmatmul.mubr.msk.f32.vlgmr.msra.gmra.mrb[4].mxu0 %vm584_vm7, %v5068_v0 }
 0x1f5   : > { %6054 = vmatpush3.bf16.msra.mxu1 %v6607_v7  ;;  %5608 = vmatprep.mubr.msk.f32.mxu1 %vm6462_vm0, %v6463_v8 }
 0x1f6   : > { %5613 = vmatprep.mubr.msk.f32.mxu0 %vm476_vm5, %v6626_v19 }
 0x1f8   : > { %5609 = vmatmul.mubr.msk.f32.vlgmr.msra.gmra.mrb[8].mxu1 %vm383_vm4, %v995_v3  ;;  %v5085_v3 = vld [vmem:[%s7340_s3 + $0x18] sm:$0xf] }
 0x1f9   : > { %5627 = vmatprep.mubr.msk.f32.mxu1 %vm584_vm7, %v6674_v32 }
 0x2bf   : > { %v5570_v9 = vpop.f32.mrb[4].mxu1  ;;  %v5581_v10 = vpop.f32.mrb[2].mxu0 }
 0x2c0   : > { %v674_v11 = vmul.f32 %v5570_v9, %v6746_v4  ;;  %v768_v12 = vmul.f32 %v5581_v10, %v6751_v5  ;;  %v657_v13 = vpop.f32.mrb[5].mxu1  ;;  %v750_v14 = vpop.f32.mrb[3].mxu0  ;;  %v1544_v9 = vld [vmem:[%s6613_s9 + $0x12] sm:$0x1]  ;;  %v1550_v10 = vrot.slane %v1543_v1, 7 }
 0x2c1   : > { %v673_v15 = vmul.f32 %v6746_v4, %v657_v13  ;;  %v767_v16 = vmul.f32 %v6751_v5, %v750_v14  ;;  %v1552_v13 = vrot.slane %v1544_v9, 6 }
 0x2c2   : > { %v770_v17 = vadd.f32 %v768_v12, %v674_v11  ;;  %v1542_v11 = vld [vmem:[%s6613_s9 + $0x2] sm:$0x1]  ;;  %v1545_v12 = vld [vmem:[%s6613_s9 + $0x1a] sm:$0x1] }
 0x2c3   : > { %v769_v18 = vadd.f32 %v767_v16, %v673_v15  ;;  %v1551_v14 = vsel %vm375_vm1, %v1550_v10, %v1542_v11  ;;  %v5091_v15 = vld [vmem:[%s7340_s3 + $0x28] sm:$0xf]  ;;  %v5097_v16 = vld [vmem:[%s7340_s3 + $0x38] sm:$0xf] }
 0x2c7   : > { %v5592_v22 = vpop.f32.mrb[6].mxu1  ;;  %v5603_v23 = vpop.f32.mrb[4].mxu0 }
 0x2c8   : > { %v864_v24 = vmul.f32 %v5592_v22, %v6760_v20  ;;  %v846_v25 = vpop.f32.mrb[7].mxu1  ;;  %v960_v26 = vmul.f32 %v5603_v23, %v6765_v21  ;;  %v942_v27 = vpop.f32.mrb[5].mxu0 }
 0x2c9   : > { %v863_v29 = vmul.f32 %v6760_v20, %v846_v25  ;;  %v959_v37 = vmul.f32 %v6765_v21, %v942_v27 }
 0x2ca   : > { %v866_v38 = vadd.f32 %v864_v24, %v770_v17  ;;  %v1554_v17 = vrot.slane %v1545_v12, 5 }
 0x2cb   : > { %v865_v39 = vadd.f32 %v863_v29, %v769_v18  ;;  %v1064_v40 = vpop.f32.mrb[8].mxu1  ;;  %v1553_v18 = vsel %vm378_vm2, %v1552_v13, %v1551_v14 }
 0x2cc   : > { %v962_v41 = vadd.f32 %v960_v26, %v866_v38  ;;  %v5610_v43 = vpop.f32.mrb[9].mxu1  ;;  %5611 = vmatprep.subr.msk.mxu0 %vm489_vm6, %v1064_v40  ;;  %v1555_v22 = vsel %vm381_vm3, %v1554_v17, %v1553_v18  ;;  %v2103_v17 = vld [vmem:[%s6613_s9 + $0xb] sm:$0x1] }
 0x2cd   : > { %v961_v45 = vadd.f32 %v959_v37, %v865_v39  ;;  %5612 = vmatpush3.msk.msra.mxu0 %vm489_vm6, %v1064_v40  ;;  %v1721_v18 = vld [vmem:[%s7340_s3 + $0x8] sm:$0xf] }
 0x2ce   : > { %v974_v47 = vadd.f32 %v6773_v44, %v962_v41  ;;  %5614 = vmatmul.mubr.msk.f32.vlgmr.msra.gmra.mrb[6].mxu0 %vm476_vm5, %v6651_v28 }
 0x2cf   : > { %v973_v48 = vadd.f32 %v6776_v46, %v961_v45  ;;  %5616 = vmatprep.mubr.msk.f32.mxu0 %vm476_vm5, %v6657_v30 }
 0x2d0   : > { %5074 = vst.msk [vmem:[%s6784_s10 + $0x40] sm:$0xf] %vm975_vm8, %v974_v47 }
 0x2d1   : > { %976 = vst.msk [vmem:[%s6784_s10] sm:$0xf] %vm975_vm8, %v973_v48 }
 0x2d2   : > { %5073 = vst.msk [vmem:[%s6784_s10 + $0x1c] sm:$0xf0] %vm978_vm9, %v973_v48  ;;  %5617 = vmatmul.mubr.msk.f32.gmra.mrb[8].mxu0 %vm476_vm5, %v6667_v31 }
 0x2d3   : > { %5638 = vmatprep.mubr.msk.f32.mxu0 %vm584_vm7, %v6679_v33 }
 0x3a1   : > { %v5615_v49 = vpop.f32.mrb[6].mxu0 }
 0x3a2   : > { %v1143_v50 = vadd.f32 %v5615_v49, %v6689_v36  ;;  %v1137_v51 = vpop.f32.mrb[7].mxu0 }
 0x3a3   : > { %v1138_v52 = vadd.f32 %v1137_v51, %v6685_v34 }
 0x3a4   : > { %v1157_v53 = vmax.f32 %v1143_v50, 0.0 }
 0x3a5   : > { %v1156_v54 = vmax.f32 %v1138_v52, 0.0  ;;  %v5618_v55 = vpop.f32.mrb[8].mxu0 }
 0x3a6   : > { %v1153_v56 = vadd.f32 %v5618_v55, %v6693_v42  ;;  %v1147_v59 = vpop.f32.mrb[9].mxu0 }
 0x3a7   : > { %v6055_v60 = vpack.c.bf16 %v1157_v53, %v1156_v54  ;;  %v1148_v61 = vadd.f32 %v1147_v59, %v6687_v35 }
 0x3a8   : > { %v1159_v62 = vmax.f32 %v1153_v56, 0.0 }
 0x3a9   : > { %v1158_v63 = vmax.f32 %v1148_v61, 0.0  ;;  %6056 = vmatprep.subr.bf16.mxu1 %v6055_v60  ;;  %6064 = vmatprep.subr.bf16.mxu0 %v6055_v60 }
 0x3aa   : > { %6058 = vmatpush3.bf16.msra.mxu1 %v6055_v60  ;;  %6066 = vmatpush3.bf16.msra.mxu0 %v6055_v60 }
 0x3ab   : > { %v6059_v0 = vpack.c.bf16 %v1159_v62, %v1158_v63 }
 0x3ad   : > { %6060 = vmatprep.subr.bf16.mxu1 %v6059_v0  ;;  %6068 = vmatprep.subr.bf16.mxu0 %v6059_v0 }
 0x3ae   : > { %6062 = vmatpush3.bf16.msra.mxu1 %v6059_v0  ;;  %6070 = vmatpush3.bf16.msra.mxu0 %v6059_v0 }
 0x3af   : > { %6072 = vmatprep.subr.bf16.mxu1 %v6055_v60  ;;  %6080 = vmatprep.subr.bf16.mxu0 %v6055_v60 }
 0x3b1   : > { %5628 = vmatmul.mubr.msk.f32.vlgmr.msra.gmra.mrb[10].mxu1 %vm584_vm7, %v1161_v2  ;;  %5639 = vmatmul.mubr.msk.f32.vlgmr.msra.gmra.mrb[10].mxu0 %vm584_vm7, %v5085_v3 }
 0x3b2   : > { %6074 = vmatpush3.bf16.msra.mxu1 %v6055_v60  ;;  %6082 = vmatpush3.bf16.msra.mxu0 %v6055_v60 }
 0x3b3   : > { %6076 = vmatprep.subr.bf16.mxu1 %v6059_v0  ;;  %6084 = vmatprep.subr.bf16.mxu0 %v6059_v0 }
 0x3b4   : > { %5649 = vmatprep.mubr.msk.f32.mxu1 %vm584_vm7, %v6710_v57  ;;  %5660 = vmatprep.mubr.msk.f32.mxu0 %vm584_vm7, %v6715_v58 }
 0x3b6   : > { %6078 = vmatpush3.bf16.msra.mxu1 %v6059_v0  ;;  %6086 = vmatpush3.bf16.msra.mxu0 %v6059_v0 }
 0x3b7   : > { %6087 = vmatprep.subr.bf16.mxu1 %v6461_v6 }
 0x3b9   : > { %5650 = vmatmul.mubr.msk.f32.vlgmr.msra.gmra.mrb[12].mxu1 %vm584_vm7, %v5091_v15  ;;  %5661 = vmatmul.mubr.msk.f32.vlgmr.msra.gmra.mrb[12].mxu0 %vm584_vm7, %v5097_v16 }
 0x3ba   : > { %6089 = vmatpush3.bf16.msra.mxu1 %v6607_v7  ;;  %5667 = vmatprep.mubr.msk.f32.mxu1 %vm6462_vm0, %v6463_v8 }
 0x3bb   : > { %5672 = vmatprep.mubr.msk.f32.mxu0 %vm476_vm5, %v6626_v19 }
 0x3bd   : > { %5668 = vmatmul.mubr.msk.f32.vlgmr.msra.gmra.mrb[14].mxu1 %vm383_vm4, %v1555_v22  ;;  %v5115_v22 = vld [vmem:[%s7340_s3 + $0x18] sm:$0xf] }
 0x3be   : > { %5686 = vmatprep.mubr.msk.f32.mxu1 %vm584_vm7, %v6674_v32 }
 0x484   : > { %v5629_v23 = vpop.f32.mrb[10].mxu1  ;;  %v5640_v24 = vpop.f32.mrb[10].mxu0 }
 0x485   : > { %v1251_v25 = vmul.f32 %v5629_v23, %v6746_v4  ;;  %v1343_v26 = vmul.f32 %v5640_v24, %v6751_v5  ;;  %v1234_v27 = vpop.f32.mrb[11].mxu1  ;;  %v1326_v29 = vpop.f32.mrb[11].mxu0  ;;  %v2104_v23 = vld [vmem:[%s6613_s9 + $0x13] sm:$0x1]  ;;  %v2110_v24 = vrot.slane %v2103_v17, 7 }
 0x486   : > { %v1250_v37 = vmul.f32 %v6746_v4, %v1234_v27  ;;  %v1342_v38 = vmul.f32 %v6751_v5, %v1326_v29  ;;  %v2112_v27 = vrot.slane %v2104_v23, 6 }
 0x487   : > { %v1345_v39 = vadd.f32 %v1343_v26, %v1251_v25  ;;  %v2102_v25 = vld [vmem:[%s6613_s9 + $0x3] sm:$0x1]  ;;  %v2105_v26 = vld [vmem:[%s6613_s9 + $0x1b] sm:$0x1] }
 0x488   : > { %v1344_v40 = vadd.f32 %v1342_v38, %v1250_v37  ;;  %v2111_v29 = vsel %vm375_vm1, %v2110_v24, %v2102_v25  ;;  %v5121_v37 = vld [vmem:[%s7340_s3 + $0x28] sm:$0xf]  ;;  %v5127_v38 = vld [vmem:[%s7340_s3 + $0x38] sm:$0xf] }
 0x48c   : > { %v5651_v41 = vpop.f32.mrb[12].mxu1  ;;  %v5662_v43 = vpop.f32.mrb[12].mxu0 }
 0x48d   : > { %v1437_v45 = vmul.f32 %v5651_v41, %v6760_v20  ;;  %v1420_v47 = vpop.f32.mrb[13].mxu1  ;;  %v1531_v48 = vmul.f32 %v5662_v43, %v6765_v21  ;;  %v1514_v49 = vpop.f32.mrb[13].mxu0 }
 0x48e   : > { %v1436_v50 = vmul.f32 %v6760_v20, %v1420_v47  ;;  %v1530_v51 = vmul.f32 %v6765_v21, %v1514_v49 }
 0x48f   : > { %v1439_v52 = vadd.f32 %v1437_v45, %v1345_v39  ;;  %v2114_v39 = vrot.slane %v2105_v26, 5 }
 0x490   : > { %v1438_v53 = vadd.f32 %v1436_v50, %v1344_v40  ;;  %v1624_v54 = vpop.f32.mrb[14].mxu1  ;;  %v2113_v40 = vsel %vm378_vm2, %v2112_v27, %v2111_v29 }
 0x491   : > { %v1533_v55 = vadd.f32 %v1531_v48, %v1439_v52  ;;  %v5669_v56 = vpop.f32.mrb[15].mxu1  ;;  %5670 = vmatprep.subr.msk.mxu0 %vm489_vm6, %v1624_v54  ;;  %v2115_v41 = vsel %vm381_vm3, %v2114_v39, %v2113_v40  ;;  %v2663_v39 = vld [vmem:[%s6613_s9 + $0xc] sm:$0x1]  ;;  %v2281_v40 = vld [vmem:[%s7340_s3 + $0x8] sm:$0xf] }
 0x492   : > { %v1532_v59 = vadd.f32 %v1530_v51, %v1438_v53  ;;  %5671 = vmatpush3.msk.msra.mxu0 %vm489_vm6, %v1624_v54 }
 0x493   : > { %v1535_v60 = vadd.f32 %v1533_v55, %v6773_v44  ;;  %5673 = vmatmul.mubr.msk.f32.vlgmr.msra.gmra.mrb[14].mxu0 %vm476_vm5, %v6651_v28 }
 0x494   : > { %v1534_v61 = vadd.f32 %v1532_v59, %v6776_v46  ;;  %5675 = vmatprep.mubr.msk.f32.mxu0 %vm476_vm5, %v6657_v30 }
 0x495   : > { %5104 = vst.msk [vmem:[%s6784_s10 + $0x44] sm:$0xf] %vm975_vm8, %v1535_v60 }
 0x496   : > { %5102 = vst.msk [vmem:[%s6784_s10 + $0x4] sm:$0xf] %vm975_vm8, %v1534_v61 }
 0x497   : > { %5103 = vst.msk [vmem:[%s6784_s10 + $0x20] sm:$0xf0] %vm978_vm9, %v1534_v61  ;;  %5676 = vmatmul.mubr.msk.f32.gmra.mrb[16].mxu0 %vm476_vm5, %v6667_v31 }
 0x498   : > { %5697 = vmatprep.mubr.msk.f32.mxu0 %vm584_vm7, %v6679_v33 }
 0x566   : > { %v5674_v62 = vpop.f32.mrb[14].mxu0 }
 0x567   : > { %v1703_v63 = vadd.f32 %v5674_v62, %v6689_v36  ;;  %v1697_v0 = vpop.f32.mrb[15].mxu0 }
 0x568   : > { %v1698_v1 = vadd.f32 %v1697_v0, %v6685_v34 }
 0x569   : > { %v1717_v2 = vmax.f32 %v1703_v63, 0.0 }
 0x56a   : > { %v1716_v3 = vmax.f32 %v1698_v1, 0.0  ;;  %v5677_v9 = vpop.f32.mrb[16].mxu0 }
 0x56b   : > { %v1713_v10 = vadd.f32 %v5677_v9, %v6693_v42  ;;  %v1707_v11 = vpop.f32.mrb[17].mxu0 }
 0x56c   : > { %v6090_v12 = vpack.c.bf16 %v1717_v2, %v1716_v3  ;;  %v1708_v13 = vadd.f32 %v1707_v11, %v6687_v35 }
 0x56d   : > { %v1719_v14 = vmax.f32 %v1713_v10, 0.0 }
 0x56e   : > { %v1718_v15 = vmax.f32 %v1708_v13, 0.0  ;;  %6091 = vmatprep.subr.bf16.mxu1 %v6090_v12  ;;  %6099 = vmatprep.subr.bf16.mxu0 %v6090_v12 }
 0x56f   : > { %6093 = vmatpush3.bf16.msra.mxu1 %v6090_v12  ;;  %6101 = vmatpush3.bf16.msra.mxu0 %v6090_v12 }
 0x570   : > { %v6094_v16 = vpack.c.bf16 %v1719_v14, %v1718_v15 }
 0x572   : > { %6095 = vmatprep.subr.bf16.mxu1 %v6094_v16  ;;  %6103 = vmatprep.subr.bf16.mxu0 %v6094_v16 }
 0x573   : > { %6097 = vmatpush3.bf16.msra.mxu1 %v6094_v16  ;;  %6105 = vmatpush3.bf16.msra.mxu0 %v6094_v16 }
 0x574   : > { %6107 = vmatprep.subr.bf16.mxu1 %v6090_v12  ;;  %6115 = vmatprep.subr.bf16.mxu0 %v6090_v12 }
 0x576   : > { %5687 = vmatmul.mubr.msk.f32.vlgmr.msra.gmra.mrb[16].mxu1 %vm584_vm7, %v1721_v18  ;;  %5698 = vmatmul.mubr.msk.f32.vlgmr.msra.gmra.mrb[18].mxu0 %vm584_vm7, %v5115_v22 }
 0x577   : > { %6109 = vmatpush3.bf16.msra.mxu1 %v6090_v12  ;;  %6117 = vmatpush3.bf16.msra.mxu0 %v6090_v12 }
 0x578   : > { %6111 = vmatprep.subr.bf16.mxu1 %v6094_v16  ;;  %6119 = vmatprep.subr.bf16.mxu0 %v6094_v16 }
 0x579   : > { %5708 = vmatprep.mubr.msk.f32.mxu1 %vm584_vm7, %v6710_v57  ;;  %5719 = vmatprep.mubr.msk.f32.mxu0 %vm584_vm7, %v6715_v58 }
 0x57b   : > { %6113 = vmatpush3.bf16.msra.mxu1 %v6094_v16  ;;  %6121 = vmatpush3.bf16.msra.mxu0 %v6094_v16 }
 0x57c   : > { %6122 = vmatprep.subr.bf16.mxu1 %v6461_v6 }
 0x57e   : > { %5709 = vmatmul.mubr.msk.f32.vlgmr.msra.gmra.mrb[18].mxu1 %vm584_vm7, %v5121_v37  ;;  %5720 = vmatmul.mubr.msk.f32.vlgmr.msra.gmra.mrb[20].mxu0 %vm584_vm7, %v5127_v38 }
 0x57f   : > { %6124 = vmatpush3.bf16.msra.mxu1 %v6607_v7  ;;  %5726 = vmatprep.mubr.msk.f32.mxu1 %vm6462_vm0, %v6463_v8 }
 0x580   : > { %5731 = vmatprep.mubr.msk.f32.mxu0 %vm476_vm5, %v6626_v19 }
 0x582   : > { %5727 = vmatmul.mubr.msk.f32.vlgmr.msra.gmra.mrb[20].mxu1 %vm383_vm4, %v2115_v41  ;;  %v5145_v41 = vld [vmem:[%s7340_s3 + $0x18] sm:$0xf] }
 0x583   : > { %5745 = vmatprep.mubr.msk.f32.mxu1 %vm584_vm7, %v6674_v32 }
 0x649   : > { %v5688_v43 = vpop.f32.mrb[16].mxu1  ;;  %v5699_v45 = vpop.f32.mrb[18].mxu0 }
 0x64a   : > { %v1811_v47 = vmul.f32 %v5688_v43, %v6746_v4  ;;  %v1903_v48 = vmul.f32 %v5699_v45, %v6751_v5  ;;  %v1794_v49 = vpop.f32.mrb[17].mxu1  ;;  %v1886_v50 = vpop.f32.mrb[19].mxu0  ;;  %v2664_v43 = vld [vmem:[%s6613_s9 + $0x14] sm:$0x1]  ;;  %v2670_v45 = vrot.slane %v2663_v39, 7 }
 0x64b   : > { %v1810_v51 = vmul.f32 %v6746_v4, %v1794_v49  ;;  %v1902_v52 = vmul.f32 %v6751_v5, %v1886_v50  ;;  %v2672_v49 = vrot.slane %v2664_v43, 6 }
 0x64c   : > { %v1905_v53 = vadd.f32 %v1903_v48, %v1811_v47  ;;  %v2662_v47 = vld [vmem:[%s6613_s9 + $0x4] sm:$0x1]  ;;  %v2665_v48 = vld [vmem:[%s6613_s9 + $0x1c] sm:$0x1] }
 0x64d   : > { %v1904_v54 = vadd.f32 %v1902_v52, %v1810_v51  ;;  %v2671_v50 = vsel %vm375_vm1, %v2670_v45, %v2662_v47  ;;  %v5151_v51 = vld [vmem:[%s7340_s3 + $0x28] sm:$0xf]  ;;  %v5157_v52 = vld [vmem:[%s7340_s3 + $0x38] sm:$0xf] }
 0x651   : > { %v5710_v55 = vpop.f32.mrb[18].mxu1  ;;  %v5721_v56 = vpop.f32.mrb[20].mxu0 }
 0x652   : > { %v1997_v59 = vmul.f32 %v5710_v55, %v6760_v20  ;;  %v1980_v60 = vpop.f32.mrb[19].mxu1  ;;  %v2091_v61 = vmul.f32 %v5721_v56, %v6765_v21  ;;  %v2074_v62 = vpop.f32.mrb[21].mxu0 }
 0x653   : > { %v1996_v63 = vmul.f32 %v6760_v20, %v1980_v60  ;;  %v2090_v0 = vmul.f32 %v6765_v21, %v2074_v62 }
 0x654   : > { %v1999_v1 = vadd.f32 %v1997_v59, %v1905_v53  ;;  %v2674_v53 = vrot.slane %v2665_v48, 5 }
 0x655   : > { %v1998_v2 = vadd.f32 %v1996_v63, %v1904_v54  ;;  %v2184_v3 = vpop.f32.mrb[20].mxu1  ;;  %v2673_v54 = vsel %vm378_vm2, %v2672_v49, %v2671_v50 }
 0x656   : > { %v2093_v9 = vadd.f32 %v2091_v61, %v1999_v1  ;;  %v5728_v10 = vpop.f32.mrb[21].mxu1  ;;  %5729 = vmatprep.subr.msk.mxu0 %vm489_vm6, %v2184_v3  ;;  %v2675_v55 = vsel %vm381_vm3, %v2674_v53, %v2673_v54  ;;  %v3223_v53 = vld [vmem:[%s6613_s9 + $0xd] sm:$0x1]  ;;  %v2841_v54 = vld [vmem:[%s7340_s3 + $0x8] sm:$0xf] }
 0x657   : > { %v2092_v11 = vadd.f32 %v2090_v0, %v1998_v2  ;;  %5730 = vmatpush3.msk.msra.mxu0 %vm489_vm6, %v2184_v3 }
 0x658   : > { %v2095_v12 = vadd.f32 %v2093_v9, %v6773_v44  ;;  %5732 = vmatmul.mubr.msk.f32.vlgmr.msra.gmra.mrb[22].mxu0 %vm476_vm5, %v6651_v28 }
 0x659   : > { %v2094_v13 = vadd.f32 %v2092_v11, %v6776_v46  ;;  %5734 = vmatprep.mubr.msk.f32.mxu0 %vm476_vm5, %v6657_v30 }
 0x65a   : > { %5134 = vst.msk [vmem:[%s6784_s10 + $0x48] sm:$0xf] %vm975_vm8, %v2095_v12 }
 0x65b   : > { %5132 = vst.msk [vmem:[%s6784_s10 + $0x8] sm:$0xf] %vm975_vm8, %v2094_v13 }
 0x65c   : > { %5133 = vst.msk [vmem:[%s6784_s10 + $0x24] sm:$0xf0] %vm978_vm9, %v2094_v13  ;;  %5735 = vmatmul.mubr.msk.f32.gmra.mrb[24].mxu0 %vm476_vm5, %v6667_v31 }
 0x65d   : > { %5756 = vmatprep.mubr.msk.f32.mxu0 %vm584_vm7, %v6679_v33 }
 0x72b   : > { %v5733_v14 = vpop.f32.mrb[22].mxu0 }
 0x72c   : > { %v2263_v15 = vadd.f32 %v5733_v14, %v6689_v36  ;;  %v2257_v16 = vpop.f32.mrb[23].mxu0 }
 0x72d   : > { %v2258_v17 = vadd.f32 %v2257_v16, %v6685_v34 }
 0x72e   : > { %v2277_v18 = vmax.f32 %v2263_v15, 0.0 }
 0x72f   : > { %v2276_v22 = vmax.f32 %v2258_v17, 0.0  ;;  %v5736_v23 = vpop.f32.mrb[24].mxu0 }
 0x730   : > { %v2273_v24 = vadd.f32 %v5736_v23, %v6693_v42  ;;  %v2267_v25 = vpop.f32.mrb[25].mxu0 }
 0x731   : > { %v6125_v26 = vpack.c.bf16 %v2277_v18, %v2276_v22  ;;  %v2268_v27 = vadd.f32 %v2267_v25, %v6687_v35 }
 0x732   : > { %v2279_v29 = vmax.f32 %v2273_v24, 0.0 }
 0x733   : > { %v2278_v37 = vmax.f32 %v2268_v27, 0.0  ;;  %6126 = vmatprep.subr.bf16.mxu1 %v6125_v26  ;;  %6134 = vmatprep.subr.bf16.mxu0 %v6125_v26 }
 0x734   : > { %6128 = vmatpush3.bf16.msra.mxu1 %v6125_v26  ;;  %6136 = vmatpush3.bf16.msra.mxu0 %v6125_v26 }
 0x735   : > { %v6129_v38 = vpack.c.bf16 %v2279_v29, %v2278_v37 }
 0x737   : > { %6130 = vmatprep.subr.bf16.mxu1 %v6129_v38  ;;  %6138 = vmatprep.subr.bf16.mxu0 %v6129_v38 }
 0x738   : > { %6132 = vmatpush3.bf16.msra.mxu1 %v6129_v38  ;;  %6140 = vmatpush3.bf16.msra.mxu0 %v6129_v38 }
 0x739   : > { %6142 = vmatprep.subr.bf16.mxu1 %v6125_v26  ;;  %6150 = vmatprep.subr.bf16.mxu0 %v6125_v26 }
 0x73b   : > { %5746 = vmatmul.mubr.msk.f32.vlgmr.msra.gmra.mrb[22].mxu1 %vm584_vm7, %v2281_v40  ;;  %5757 = vmatmul.mubr.msk.f32.vlgmr.msra.gmra.mrb[26].mxu0 %vm584_vm7, %v5145_v41 }
 0x73c   : > { %6144 = vmatpush3.bf16.msra.mxu1 %v6125_v26  ;;  %6152 = vmatpush3.bf16.msra.mxu0 %v6125_v26 }
 0x73d   : > { %6146 = vmatprep.subr.bf16.mxu1 %v6129_v38  ;;  %6154 = vmatprep.subr.bf16.mxu0 %v6129_v38 }
 0x73e   : > { %5767 = vmatprep.mubr.msk.f32.mxu1 %vm584_vm7, %v6710_v57  ;;  %5778 = vmatprep.mubr.msk.f32.mxu0 %vm584_vm7, %v6715_v58 }
 0x740   : > { %6148 = vmatpush3.bf16.msra.mxu1 %v6129_v38  ;;  %6156 = vmatpush3.bf16.msra.mxu0 %v6129_v38 }
 0x741   : > { %6157 = vmatprep.subr.bf16.mxu1 %v6461_v6 }
 0x743   : > { %5768 = vmatmul.mubr.msk.f32.vlgmr.msra.gmra.mrb[24].mxu1 %vm584_vm7, %v5151_v51  ;;  %5779 = vmatmul.mubr.msk.f32.vlgmr.msra.gmra.mrb[28].mxu0 %vm584_vm7, %v5157_v52 }
 0x744   : > { %6159 = vmatpush3.bf16.msra.mxu1 %v6607_v7  ;;  %5785 = vmatprep.mubr.msk.f32.mxu1 %vm6462_vm0, %v6463_v8 }
 0x745   : > { %5790 = vmatprep.mubr.msk.f32.mxu0 %vm476_vm5, %v6626_v19 }
 0x747   : > { %5786 = vmatmul.mubr.msk.f32.vlgmr.msra.gmra.mrb[26].mxu1 %vm383_vm4, %v2675_v55  ;;  %v5175_v55 = vld [vmem:[%s7340_s3 + $0x18] sm:$0xf] }
 0x748   : > { %5804 = vmatprep.mubr.msk.f32.mxu1 %vm584_vm7, %v6674_v32 }
 0x80e   : > { %v5747_v56 = vpop.f32.mrb[22].mxu1  ;;  %v5758_v59 = vpop.f32.mrb[26].mxu0 }
 0x80f   : > { %v2371_v60 = vmul.f32 %v5747_v56, %v6746_v4  ;;  %v2463_v61 = vmul.f32 %v5758_v59, %v6751_v5  ;;  %v2354_v62 = vpop.f32.mrb[23].mxu1  ;;  %v2446_v63 = vpop.f32.mrb[27].mxu0  ;;  %v3224_v56 = vld [vmem:[%s6613_s9 + $0x15] sm:$0x1]  ;;  %v3230_v59 = vrot.slane %v3223_v53, 7 }
 0x810   : > { %v2370_v0 = vmul.f32 %v6746_v4, %v2354_v62  ;;  %v2462_v1 = vmul.f32 %v6751_v5, %v2446_v63  ;;  %v3232_v62 = vrot.slane %v3224_v56, 6 }
 0x811   : > { %v2465_v2 = vadd.f32 %v2463_v61, %v2371_v60  ;;  %v3222_v60 = vld [vmem:[%s6613_s9 + $0x5] sm:$0x1]  ;;  %v3225_v61 = vld [vmem:[%s6613_s9 + $0x1d] sm:$0x1] }
 0x812   : > { %v2464_v3 = vadd.f32 %v2462_v1, %v2370_v0  ;;  %v3231_v63 = vsel %vm375_vm1, %v3230_v59, %v3222_v60  ;;  %v5181_v0 = vld [vmem:[%s7340_s3 + $0x28] sm:$0xf]  ;;  %v5187_v1 = vld [vmem:[%s7340_s3 + $0x38] sm:$0xf]  ;;  %v3783_v60 = vld [vmem:[%s6613_s9 + $0xe] sm:$0x1] }
 0x816   : > { %v5769_v9 = vpop.f32.mrb[24].mxu1  ;;  %v5780_v10 = vpop.f32.mrb[28].mxu0 }
 0x817   : > { %v2557_v11 = vmul.f32 %v5769_v9, %v6760_v20  ;;  %v2540_v12 = vpop.f32.mrb[25].mxu1  ;;  %v2651_v13 = vmul.f32 %v5780_v10, %v6765_v21  ;;  %v2634_v14 = vpop.f32.mrb[29].mxu0 }
 0x818   : > { %v2556_v15 = vmul.f32 %v6760_v20, %v2540_v12  ;;  %v2650_v16 = vmul.f32 %v6765_v21, %v2634_v14 }
 0x819   : > { %v2559_v17 = vadd.f32 %v2557_v11, %v2465_v2  ;;  %v3234_v2 = vrot.slane %v3225_v61, 5  ;;  %v3401_v61 = vld [vmem:[%s7340_s3 + $0x8] sm:$0xf] }
 0x81a   : > { %v2558_v18 = vadd.f32 %v2556_v15, %v2464_v3  ;;  %v2744_v22 = vpop.f32.mrb[26].mxu1  ;;  %v3233_v3 = vsel %vm378_vm2, %v3232_v62, %v3231_v63  ;;  %v5205_v62 = vld [vmem:[%s7340_s3 + $0x18] sm:$0xf]  ;;  %v3784_v63 = vld [vmem:[%s6613_s9 + $0x16] sm:$0x1] }
 0x81b   : > { %v2653_v23 = vadd.f32 %v2651_v13, %v2559_v17  ;;  %v5787_v24 = vpop.f32.mrb[27].mxu1  ;;  %5788 = vmatprep.subr.msk.mxu0 %vm489_vm6, %v2744_v22  ;;  %v3235_v9 = vsel %vm381_vm3, %v3234_v2, %v3233_v3  ;;  %v3785_v2 = vld [vmem:[%s6613_s9 + $0x1e] sm:$0x1]  ;;  %v3792_v3 = vrot.slane %v3784_v63, 6 }
 0x81c   : > { %v2652_v25 = vadd.f32 %v2650_v16, %v2558_v18  ;;  %5789 = vmatpush3.msk.msra.mxu0 %vm489_vm6, %v2744_v22 }
 0x81d   : > { %v2655_v26 = vadd.f32 %v2653_v23, %v6773_v44  ;;  %5791 = vmatmul.mubr.msk.f32.vlgmr.msra.gmra.mrb[30].mxu0 %vm476_vm5, %v6651_v28 }
 0x81e   : > { %v2654_v27 = vadd.f32 %v2652_v25, %v6776_v46  ;;  %5793 = vmatprep.mubr.msk.f32.mxu0 %vm476_vm5, %v6657_v30 }
 0x81f   : > { %5164 = vst.msk [vmem:[%s6784_s10 + $0x4c] sm:$0xf] %vm975_vm8, %v2655_v26 }
 0x820   : > { %5162 = vst.msk [vmem:[%s6784_s10 + $0xc] sm:$0xf] %vm975_vm8, %v2654_v27 }
 0x821   : > { %5163 = vst.msk [vmem:[%s6784_s10 + $0x28] sm:$0xf0] %vm978_vm9, %v2654_v27  ;;  %5794 = vmatmul.mubr.msk.f32.gmra.mrb[32].mxu0 %vm476_vm5, %v6667_v31 }
 0x822   : > { %5815 = vmatprep.mubr.msk.f32.mxu0 %vm584_vm7, %v6679_v33 }
 0x8f0   : > { %v5792_v29 = vpop.f32.mrb[30].mxu0 }
 0x8f1   : > { %v2823_v37 = vadd.f32 %v5792_v29, %v6689_v36  ;;  %v2817_v38 = vpop.f32.mrb[31].mxu0 }
 0x8f2   : > { %v2818_v39 = vadd.f32 %v2817_v38, %v6685_v34 }
 0x8f3   : > { %v2837_v40 = vmax.f32 %v2823_v37, 0.0 }
 0x8f4   : > { %v2836_v41 = vmax.f32 %v2818_v39, 0.0  ;;  %v5795_v43 = vpop.f32.mrb[32].mxu0 }
 0x8f5   : > { %v2833_v45 = vadd.f32 %v5795_v43, %v6693_v42  ;;  %v2827_v47 = vpop.f32.mrb[33].mxu0 }
 0x8f6   : > { %v6160_v48 = vpack.c.bf16 %v2837_v40, %v2836_v41  ;;  %v2828_v49 = vadd.f32 %v2827_v47, %v6687_v35 }
 0x8f7   : > { %v2839_v50 = vmax.f32 %v2833_v45, 0.0 }
 0x8f8   : > { %v2838_v51 = vmax.f32 %v2828_v49, 0.0  ;;  %6161 = vmatprep.subr.bf16.mxu1 %v6160_v48  ;;  %6169 = vmatprep.subr.bf16.mxu0 %v6160_v48 }
 0x8f9   : > { %6163 = vmatpush3.bf16.msra.mxu1 %v6160_v48  ;;  %6171 = vmatpush3.bf16.msra.mxu0 %v6160_v48 }
 0x8fa   : > { %v6164_v52 = vpack.c.bf16 %v2839_v50, %v2838_v51 }
 0x8fc   : > { %6165 = vmatprep.subr.bf16.mxu1 %v6164_v52  ;;  %6173 = vmatprep.subr.bf16.mxu0 %v6164_v52 }
 0x8fd   : > { %6167 = vmatpush3.bf16.msra.mxu1 %v6164_v52  ;;  %6175 = vmatpush3.bf16.msra.mxu0 %v6164_v52 }
 0x8fe   : > { %6177 = vmatprep.subr.bf16.mxu1 %v6160_v48  ;;  %6185 = vmatprep.subr.bf16.mxu0 %v6160_v48 }
 0x900   : > { %5805 = vmatmul.mubr.msk.f32.vlgmr.msra.gmra.mrb[28].mxu1 %vm584_vm7, %v2841_v54  ;;  %5816 = vmatmul.mubr.msk.f32.vlgmr.msra.gmra.mrb[34].mxu0 %vm584_vm7, %v5175_v55 }
 0x901   : > { %6179 = vmatpush3.bf16.msra.mxu1 %v6160_v48  ;;  %6187 = vmatpush3.bf16.msra.mxu0 %v6160_v48 }
 0x902   : > { %6181 = vmatprep.subr.bf16.mxu1 %v6164_v52  ;;  %6189 = vmatprep.subr.bf16.mxu0 %v6164_v52 }
 0x903   : > { %5826 = vmatprep.mubr.msk.f32.mxu1 %vm584_vm7, %v6710_v57  ;;  %5837 = vmatprep.mubr.msk.f32.mxu0 %vm584_vm7, %v6715_v58 }
 0x905   : > { %6183 = vmatpush3.bf16.msra.mxu1 %v6164_v52  ;;  %6191 = vmatpush3.bf16.msra.mxu0 %v6164_v52 }
 0x906   : > { %6192 = vmatprep.subr.bf16.mxu1 %v6461_v6 }
 0x908   : > { %5827 = vmatmul.mubr.msk.f32.vlgmr.msra.gmra.mrb[30].mxu1 %vm584_vm7, %v5181_v0  ;;  %5838 = vmatmul.mubr.msk.f32.vlgmr.msra.gmra.mrb[36].mxu0 %vm584_vm7, %v5187_v1  ;;  %v3790_v0 = vrot.slane %v3783_v60, 7  ;;  %v3782_v1 = vld [vmem:[%s6613_s9 + $0x6] sm:$0x1] }
 0x909   : > { %6194 = vmatpush3.bf16.msra.mxu1 %v6607_v7  ;;  %5844 = vmatprep.mubr.msk.f32.mxu1 %vm6462_vm0, %v6463_v8 }
 0x90a   : > { %5849 = vmatprep.mubr.msk.f32.mxu0 %vm476_vm5, %v6626_v19 }
 0x90c   : > { %5845 = vmatmul.mubr.msk.f32.vlgmr.msra.gmra.mrb[32].mxu1 %vm383_vm4, %v3235_v9  ;;  %v3791_v9 = vsel %vm375_vm1, %v3790_v0, %v3782_v1  ;;  %v4343_v1 = vld [vmem:[%s6613_s9 + $0xf] sm:$0x1] }
 0x90d   : > { %5863 = vmatprep.mubr.msk.f32.mxu1 %vm584_vm7, %v6674_v32 }
 0x9d3   : > { %v5806_v10 = vpop.f32.mrb[28].mxu1  ;;  %v5817_v11 = vpop.f32.mrb[34].mxu0 }
 0x9d4   : > { %v2931_v12 = vmul.f32 %v5806_v10, %v6746_v4  ;;  %v3023_v13 = vmul.f32 %v5817_v11, %v6751_v5  ;;  %v2914_v14 = vpop.f32.mrb[29].mxu1  ;;  %v3006_v15 = vpop.f32.mrb[35].mxu0  ;;  %v5211_v10 = vld [vmem:[%s7340_s3 + $0x28] sm:$0xf]  ;;  %v5217_v11 = vld [vmem:[%s7340_s3 + $0x38] sm:$0xf] }
 0x9d5   : > { %v2930_v16 = vmul.f32 %v6746_v4, %v2914_v14  ;;  %v3022_v17 = vmul.f32 %v6751_v5, %v3006_v15 }
 0x9d6   : > { %v3025_v18 = vadd.f32 %v3023_v13, %v2931_v12  ;;  %v3794_v12 = vrot.slane %v3785_v2, 5  ;;  %v7098_v13 = vld [vmem:[%s7353_s1] sm:$0xff]  ;;  %v3961_v2 = vld [vmem:[%s7340_s3 + $0x8] sm:$0xf] }
 0x9d7   : > { %v3024_v22 = vadd.f32 %v3022_v17, %v2930_v16 }
 0x9db   : > { %v5828_v19 = vpop.f32.mrb[30].mxu1  ;;  %v5839_v23 = vpop.f32.mrb[36].mxu0 }
 0x9dc   : > { %v3117_v24 = vmul.f32 %v5828_v19, %v6760_v20  ;;  %v3100_v25 = vpop.f32.mrb[31].mxu1  ;;  %v3211_v32 = vmul.f32 %v5839_v23, %v6765_v21  ;;  %v3194_v26 = vpop.f32.mrb[37].mxu0 }
 0x9dd   : > { %v3116_v27 = vmul.f32 %v6760_v20, %v3100_v25  ;;  %v3210_v29 = vmul.f32 %v6765_v21, %v3194_v26 }
 0x9de   : > { %v3119_v37 = vadd.f32 %v3117_v24, %v3025_v18 }
 0x9df   : > { %v3118_v38 = vadd.f32 %v3116_v27, %v3024_v22  ;;  %v3304_v39 = vpop.f32.mrb[32].mxu1 }
 0x9e0   : > { %v3213_v40 = vadd.f32 %v3211_v32, %v3119_v37  ;;  %v5846_v41 = vpop.f32.mrb[33].mxu1  ;;  %5847 = vmatprep.subr.msk.mxu0 %vm489_vm6, %v3304_v39 }
 0x9e1   : > { %v3212_v43 = vadd.f32 %v3210_v29, %v3118_v38  ;;  %5848 = vmatpush3.msk.msra.mxu0 %vm489_vm6, %v3304_v39 }
 0x9e2   : > { %v3215_v45 = vadd.f32 %v3213_v40, %v6773_v44  ;;  %5850 = vmatmul.mubr.msk.f32.vlgmr.msra.gmra.mrb[38].mxu0 %vm476_vm5, %v6651_v28 }
 0x9e3   : > { %v3214_v47 = vadd.f32 %v3212_v43, %v6776_v46  ;;  %5852 = vmatprep.mubr.msk.f32.mxu0 %vm476_vm5, %v6657_v30 }
 0x9e4   : > { %5194 = vst.msk [vmem:[%s6784_s10 + $0x50] sm:$0xf] %vm975_vm8, %v3215_v45 }
 0x9e5   : > { %5192 = vst.msk [vmem:[%s6784_s10 + $0x10] sm:$0xf] %vm975_vm8, %v3214_v47 }
 0x9e6   : > { %5193 = vst.msk [vmem:[%s6784_s10 + $0x2c] sm:$0xf0] %vm978_vm9, %v3214_v47  ;;  %5853 = vmatmul.mubr.msk.f32.gmra.mrb[40].mxu0 %vm476_vm5, %v6667_v31 }
 0x9e7   : > { %5874 = vmatprep.mubr.msk.f32.mxu0 %vm584_vm7, %v6679_v33 }
 0xab5   : > { %v5851_v48 = vpop.f32.mrb[38].mxu0 }
 0xab6   : > { %v3383_v28 = vadd.f32 %v5851_v48, %v6689_v36  ;;  %v3377_v49 = vpop.f32.mrb[39].mxu0 }
 0xab7   : > { %v3378_v50 = vadd.f32 %v3377_v49, %v6685_v34  ;;  %v7138_v49 = vld [vmem:[%s7353_s1 + $0x18] sm:$0xff] }
 0xab8   : > { %v3397_v51 = vmax.f32 %v3383_v28, 0.0  ;;  %v7125_v28 = vld [vmem:[%s7353_s1 + $0x10] sm:$0xff] }
 0xab9   : > { %v3396_v30 = vmax.f32 %v3378_v50, 0.0  ;;  %v5854_v52 = vpop.f32.mrb[40].mxu0  ;;  %v3960_v50 = vld [vmem:[%s7340_s3] sm:$0xff] }
 0xaba   : > { %v3393_v53 = vadd.f32 %v5854_v52, %v6693_v42  ;;  %v3387_v54 = vpop.f32.mrb[41].mxu0 }
 0xabb   : > { %v6195_v55 = vpack.c.bf16 %v3397_v51, %v3396_v30  ;;  %v3388_v56 = vadd.f32 %v3387_v54, %v6687_v35  ;;  %v7148_v51 = vld [vmem:[%s7340_s3 + $0x10] sm:$0xff] }
 0xabc   : > { %v3399_v31 = vmax.f32 %v3393_v53, 0.0 }
 0xabd   : > { %v3398_v59 = vmax.f32 %v3388_v56, 0.0  ;;  %6196 = vmatprep.subr.bf16.mxu1 %v6195_v55  ;;  %6204 = vmatprep.subr.bf16.mxu0 %v6195_v55 }
 0xabe   : > { %6198 = vmatpush3.bf16.msra.mxu1 %v6195_v55  ;;  %6206 = vmatpush3.bf16.msra.mxu0 %v6195_v55 }
 0xabf   : > { %v6199_v33 = vpack.c.bf16 %v3399_v31, %v3398_v59 }
 0xac1   : > { %6200 = vmatprep.subr.bf16.mxu1 %v6199_v33  ;;  %6208 = vmatprep.subr.bf16.mxu0 %v6199_v33 }
 0xac2   : > { %6202 = vmatpush3.bf16.msra.mxu1 %v6199_v33  ;;  %6210 = vmatpush3.bf16.msra.mxu0 %v6199_v33 }
 0xac3   : > { %6212 = vmatprep.subr.bf16.mxu1 %v6195_v55  ;;  %6220 = vmatprep.subr.bf16.mxu0 %v6195_v55 }
 0xac5   : > { %5864 = vmatmul.mubr.msk.f32.vlgmr.msra.gmra.mrb[34].mxu1 %vm584_vm7, %v3401_v61  ;;  %5875 = vmatmul.mubr.msk.f32.vlgmr.msra.gmra.mrb[42].mxu0 %vm584_vm7, %v5205_v62 }
 0xac6   : > { %6214 = vmatpush3.bf16.msra.mxu1 %v6195_v55  ;;  %6222 = vmatpush3.bf16.msra.mxu0 %v6195_v55 }
 0xac7   : > { %6216 = vmatprep.subr.bf16.mxu1 %v6199_v33  ;;  %6224 = vmatprep.subr.bf16.mxu0 %v6199_v33 }
 0xac8   : > { %5885 = vmatprep.mubr.msk.f32.mxu1 %vm584_vm7, %v6710_v57  ;;  %5896 = vmatprep.mubr.msk.f32.mxu0 %vm584_vm7, %v6715_v58  ;;  %v3793_v57 = vsel %vm378_vm2, %v3792_v3, %v3791_v9  ;;  %v5235_v3 = vld [vmem:[%s7340_s3 + $0x18] sm:$0xf]  ;;  %v4344_v9 = vld [vmem:[%s6613_s9 + $0x17] sm:$0x1] }
 0xac9   : > { %v3795_v58 = vsel %vm381_vm3, %v3794_v12, %v3793_v57  ;;  %v7175_v12 = vld [vmem:[%s7340_s3 + $0x30] sm:$0xff]  ;;  %v4342_v57 = vld [vmem:[%s6613_s9 + $0x7] sm:$0x1] }
 0xaca   : > { %6218 = vmatpush3.bf16.msra.mxu1 %v6199_v33  ;;  %6226 = vmatpush3.bf16.msra.mxu0 %v6199_v33 }
 0xacb   : > { %6227 = vmatprep.subr.bf16.mxu1 %v6461_v6 }
 0xacd   : > { %5886 = vmatmul.mubr.msk.f32.vlgmr.msra.gmra.mrb[36].mxu1 %vm584_vm7, %v5211_v10  ;;  %5897 = vmatmul.mubr.msk.f32.vlgmr.msra.gmra.mrb[44].mxu0 %vm584_vm7, %v5217_v11  ;;  %v4350_v10 = vrot.slane %v4343_v1, 7  ;;  %v7170_v11 = vld [vmem:[%s7340_s3 + $0x20] sm:$0xff] }
 0xace   : > { %6229 = vmatpush3.bf16.msra.mxu1 %v6607_v7  ;;  %5903 = vmatprep.mubr.msk.f32.mxu1 %vm6462_vm0, %v6463_v8 }
 0xacf   : > { %5908 = vmatprep.mubr.msk.f32.mxu0 %vm476_vm5, %v7098_v13 }
 0xad1   : > { %5904 = vmatmul.mubr.msk.f32.vlgmr.msra.gmra.mrb[38].mxu1 %vm383_vm4, %v3795_v58  ;;  %v4345_v58 = vld [vmem:[%s6613_s9 + $0x1f] sm:$0x1] }
 0xad2   : > { %5922 = vmatprep.mubr.msk.f32.mxu1 %vm584_vm7, %v3960_v50 }
 0xb98   : > { %v5865_v14 = vpop.f32.mrb[34].mxu1  ;;  %v5876_v15 = vpop.f32.mrb[42].mxu0 }
 0xb99   : > { %v3491_v16 = vmul.f32 %v5865_v14, %v6746_v4  ;;  %v3583_v17 = vmul.f32 %v5876_v15, %v6751_v5  ;;  %v3474_v18 = vpop.f32.mrb[35].mxu1  ;;  %v3566_v22 = vpop.f32.mrb[43].mxu0  ;;  %v4352_v14 = vrot.slane %v4344_v9, 6  ;;  %v4351_v15 = vsel %vm375_vm1, %v4350_v10, %v4342_v57 }
 0xb9a   : > { %v3490_v19 = vmul.f32 %v6746_v4, %v3474_v18  ;;  %v3582_v23 = vmul.f32 %v6751_v5, %v3566_v22  ;;  %v4354_v18 = vrot.slane %v4345_v58, 5 }
 0xb9b   : > { %v3585_v24 = vadd.f32 %v3583_v17, %v3491_v16  ;;  %v5241_v16 = vld [vmem:[%s7340_s3 + $0x28] sm:$0xf]  ;;  %v5247_v17 = vld [vmem:[%s7340_s3 + $0x38] sm:$0xf]  ;;  %v4353_v22 = vsel %vm378_vm2, %v4352_v14, %v4351_v15 }
 0xb9c   : > { %v3584_v25 = vadd.f32 %v3582_v23, %v3490_v19  ;;  %v4355_v19 = vsel %vm381_vm3, %v4354_v18, %v4353_v22 }
 0xba0   : > { %v5887_v32 = vpop.f32.mrb[36].mxu1  ;;  %v5898_v26 = vpop.f32.mrb[44].mxu0 }
 0xba1   : > { %v3677_v27 = vmul.f32 %v5887_v32, %v6760_v20  ;;  %v3660_v29 = vpop.f32.mrb[37].mxu1  ;;  %v3771_v37 = vmul.f32 %v5898_v26, %v6765_v21  ;;  %v3754_v38 = vpop.f32.mrb[45].mxu0 }
 0xba2   : > { %v3676_v39 = vmul.f32 %v6760_v20, %v3660_v29  ;;  %v3770_v40 = vmul.f32 %v6765_v21, %v3754_v38  ;;  %v7117_v20 = vld [vmem:[%s7353_s1 + $0x8] sm:$0xff]  ;;  %v7219_v38 = vld [vmem:[%s7343_s6 + $0x2] ss:$0 sm:$0xff] }
 0xba3   : > { %v3679_v41 = vadd.f32 %v3677_v27, %v3585_v24 }
 0xba4   : > { %v3678_v4 = vadd.f32 %v3676_v39, %v3584_v25  ;;  %v3864_v5 = vpop.f32.mrb[38].mxu1  ;;  %v7224_v39 = vld [vmem:[%s7343_s6 + $0x3] ss:$0 sm:$0xff] }
 0xba5   : > { %v3773_v43 = vadd.f32 %v3771_v37, %v3679_v41  ;;  %v5905_v45 = vpop.f32.mrb[39].mxu1  ;;  %5906 = vmatprep.subr.msk.mxu0 %vm489_vm6, %v3864_v5 }
 0xba6   : > { %v3772_v47 = vadd.f32 %v3770_v40, %v3678_v4  ;;  %5907 = vmatpush3.msk.msra.mxu0 %vm489_vm6, %v3864_v5 }
 0xba7   : > { %v3775_v48 = vadd.f32 %v3773_v43, %v6773_v44  ;;  %5909 = vmatmul.mubr.msk.f32.vlgmr.msra.gmra.mrb[46].mxu0 %vm476_vm5, %v7117_v20 }
 0xba8   : > { %v3774_v21 = vadd.f32 %v3772_v47, %v6776_v46  ;;  %5911 = vmatprep.mubr.msk.f32.mxu0 %vm476_vm5, %v7125_v28 }
 0xba9   : > { %5224 = vst.msk [vmem:[%s6784_s10 + $0x54] sm:$0xf] %vm975_vm8, %v3775_v48 }
 0xbaa   : > { %5222 = vst.msk [vmem:[%s6784_s10 + $0x14] sm:$0xf] %vm975_vm8, %v3774_v21 }
 0xbab   : > { %5223 = vst.msk [vmem:[%s6784_s10 + $0x30] sm:$0xf0] %vm978_vm9, %v3774_v21  ;;  %5912 = vmatmul.mubr.msk.f32.gmra.mrb[48].mxu0 %vm476_vm5, %v7138_v49 }
 0xbac   : > { %5933 = vmatprep.mubr.msk.f32.mxu0 %vm584_vm7, %v7148_v51 }
 0xc7a   : > { %v5910_v30 = vpop.f32.mrb[46].mxu0 }
 0xc7b   : > { %v3943_v52 = vadd.f32 %v5910_v30, %v6689_v36  ;;  %v3937_v53 = vpop.f32.mrb[47].mxu0 }
 0xc7c   : > { %v3938_v54 = vadd.f32 %v3937_v53, %v6685_v34 }
 0xc7d   : > { %v3957_v55 = vmax.f32 %v3943_v52, 0.0 }
 0xc7e   : > { %v3956_v56 = vmax.f32 %v3938_v54, 0.0  ;;  %v5913_v31 = vpop.f32.mrb[48].mxu0 }
 0xc7f   : > { %v3953_v59 = vadd.f32 %v5913_v31, %v6693_v42  ;;  %v3947_v33 = vpop.f32.mrb[49].mxu0 }
 0xc80   : > { %v6230_v60 = vpack.c.bf16 %v3957_v55, %v3956_v56  ;;  %v3948_v61 = vadd.f32 %v3947_v33, %v6687_v35 }
 0xc81   : > { %v3959_v62 = vmax.f32 %v3953_v59, 0.0 }
 0xc82   : > { %v3958_v63 = vmax.f32 %v3948_v61, 0.0  ;;  %6231 = vmatprep.subr.bf16.mxu1 %v6230_v60  ;;  %6239 = vmatprep.subr.bf16.mxu0 %v6230_v60 }
 0xc83   : > { %6233 = vmatpush3.bf16.msra.mxu1 %v6230_v60  ;;  %6241 = vmatpush3.bf16.msra.mxu0 %v6230_v60 }
 0xc84   : > { %v6234_v0 = vpack.c.bf16 %v3959_v62, %v3958_v63 }
 0xc86   : > { %6235 = vmatprep.subr.bf16.mxu1 %v6234_v0  ;;  %6243 = vmatprep.subr.bf16.mxu0 %v6234_v0 }
 0xc87   : > { %6237 = vmatpush3.bf16.msra.mxu1 %v6234_v0  ;;  %6245 = vmatpush3.bf16.msra.mxu0 %v6234_v0 }
 0xc88   : > { %6247 = vmatprep.subr.bf16.mxu1 %v6230_v60  ;;  %6255 = vmatprep.subr.bf16.mxu0 %v6230_v60 }
 0xc8a   : > { %5923 = vmatmul.mubr.msk.f32.vlgmr.msra.gmra.mrb[40].mxu1 %vm584_vm7, %v3961_v2  ;;  %5934 = vmatmul.mubr.msk.f32.vlgmr.msra.gmra.mrb[50].mxu0 %vm584_vm7, %v5235_v3 }
 0xc8b   : > { %6249 = vmatpush3.bf16.msra.mxu1 %v6230_v60  ;;  %6257 = vmatpush3.bf16.msra.mxu0 %v6230_v60 }
 0xc8c   : > { %6251 = vmatprep.subr.bf16.mxu1 %v6234_v0  ;;  %6259 = vmatprep.subr.bf16.mxu0 %v6234_v0 }
 0xc8d   : > { %5944 = vmatprep.mubr.msk.f32.mxu1 %vm584_vm7, %v7170_v11  ;;  %5955 = vmatprep.mubr.msk.f32.mxu0 %vm584_vm7, %v7175_v12 }
 0xc8f   : > { %6253 = vmatpush3.bf16.msra.mxu1 %v6234_v0  ;;  %6261 = vmatpush3.bf16.msra.mxu0 %v6234_v0 }
 0xc90   : > { %6262 = vmatprep.subr.bf16.mxu1 %v6461_v6  ;;  %v7205_v6 = vld [vmem:[%s7343_s6] ss:$0 sm:$0xff] }
 0xc92   : > { %5945 = vmatmul.mubr.msk.f32.vlgmr.msra.gmra.mrb[42].mxu1 %vm584_vm7, %v5241_v16  ;;  %5956 = vmatmul.mubr.msk.f32.vlgmr.msra.gmra.mrb[52].mxu0 %vm584_vm7, %v5247_v17 }
 0xc93   : > { %6264 = vmatpush3.bf16.msra.mxu1 %v6607_v7  ;;  %5962 = vmatprep.mubr.msk.f32.mxu1 %vm6462_vm0, %v6463_v8  ;;  %v7210_v7 = vld [vmem:[%s7343_s6 + $0x1] ss:$0 sm:$0xff] }
 0xc94   : > { %5967 = vmatprep.mubr.msk.f32.mxu0 %vm476_vm5, %v7098_v13 }
 0xc96   : > { %5963 = vmatmul.mubr.msk.f32.vlgmr.msra.gmra.mrb[44].mxu1 %vm383_vm4, %v4355_v19 }
 0xc97   : > { %5981 = vmatprep.mubr.msk.f32.mxu1 %vm584_vm7, %v3960_v50 }
 0xd5d   : > { %v5924_v8 = vpop.f32.mrb[40].mxu1  ;;  %v5935_v23 = vpop.f32.mrb[50].mxu0 }
 0xd5e   : > { %v4051_v24 = vmul.f32 %v5924_v8, %v7205_v6  ;;  %v4143_v13 = vmul.f32 %v5935_v23, %v7210_v7  ;;  %v4034_v25 = vpop.f32.mrb[41].mxu1  ;;  %v4126_v32 = vpop.f32.mrb[51].mxu0 }
 0xd5f   : > { %v4050_v26 = vmul.f32 %v7205_v6, %v4034_v25  ;;  %v4142_v27 = vmul.f32 %v7210_v7, %v4126_v32 }
 0xd60   : > { %v4145_v29 = vadd.f32 %v4143_v13, %v4051_v24 }
 0xd61   : > { %v4144_v37 = vadd.f32 %v4142_v27, %v4050_v26 }
 0xd65   : > { %v5946_v40 = vpop.f32.mrb[42].mxu1  ;;  %v5957_v41 = vpop.f32.mrb[52].mxu0 }
 0xd66   : > { %v4237_v4 = vmul.f32 %v5946_v40, %v7219_v38  ;;  %v4220_v5 = vpop.f32.mrb[43].mxu1  ;;  %v4331_v43 = vmul.f32 %v5957_v41, %v7224_v39  ;;  %v4314_v45 = vpop.f32.mrb[53].mxu0 }
 0xd67   : > { %v4236_v47 = vmul.f32 %v7219_v38, %v4220_v5  ;;  %v4330_v48 = vmul.f32 %v7224_v39, %v4314_v45 }
 0xd68   : > { %v4239_v21 = vadd.f32 %v4237_v4, %v4145_v29 }
 0xd69   : > { %v4238_v50 = vadd.f32 %v4236_v47, %v4144_v37  ;;  %v4424_v30 = vpop.f32.mrb[44].mxu1 }
 0xd6a   : > { %v4333_v52 = vadd.f32 %v4331_v43, %v4239_v21  ;;  %v5964_v53 = vpop.f32.mrb[45].mxu1  ;;  %5965 = vmatprep.subr.msk.mxu0 %vm489_vm6, %v4424_v30 }
 0xd6b   : > { %v4332_v54 = vadd.f32 %v4330_v48, %v4238_v50  ;;  %5966 = vmatpush3.msk.msra.mxu0 %vm489_vm6, %v4424_v30 }
 0xd6c   : > { %v4335_v55 = vadd.f32 %v4333_v52, %v6773_v44  ;;  %5968 = vmatmul.mubr.msk.f32.vlgmr.msra.gmra.mrb[54].mxu0 %vm476_vm5, %v7117_v20 }
 0xd6d   : > { %v4334_v56 = vadd.f32 %v4332_v54, %v6776_v46  ;;  %5970 = vmatprep.mubr.msk.f32.mxu0 %vm476_vm5, %v7125_v28 }
 0xd6e   : > { %5254 = vst.msk [vmem:[%s6784_s10 + $0x58] sm:$0xf] %vm975_vm8, %v4335_v55 }
 0xd6f   : > { %5252 = vst.msk [vmem:[%s6784_s10 + $0x18] sm:$0xf] %vm975_vm8, %v4334_v56 }
 0xd70   : > { %5253 = vst.msk [vmem:[%s6784_s10 + $0x34] sm:$0xf0] %vm978_vm9, %v4334_v56  ;;  %5971 = vmatmul.mubr.msk.f32.gmra.mrb[56].mxu0 %vm476_vm5, %v7138_v49 }
 0xd71   : > { %5992 = vmatprep.mubr.msk.f32.mxu0 %vm584_vm7, %v7148_v51 }
 0xe3f   : > { %v5969_v31 = vpop.f32.mrb[54].mxu0 }
 0xe40   : > { %v4503_v20 = vadd.f32 %v5969_v31, %v6689_v36  ;;  %v4497_v59 = vpop.f32.mrb[55].mxu0  ;;  %v5265_v36 = vld [vmem:[%s7340_s3 + $0x18] sm:$0xf] }
 0xe41   : > { %v4498_v33 = vadd.f32 %v4497_v59, %v6685_v34  ;;  %v4521_v34 = vld [vmem:[%s7340_s3 + $0x8] sm:$0xf] }
 0xe42   : > { %v4517_v60 = vmax.f32 %v4503_v20, 0.0 }
 0xe43   : > { %v4516_v28 = vmax.f32 %v4498_v33, 0.0  ;;  %v5972_v61 = vpop.f32.mrb[56].mxu0 }
 0xe44   : > { %v4513_v62 = vadd.f32 %v5972_v61, %v6693_v42  ;;  %v4507_v63 = vpop.f32.mrb[57].mxu0  ;;  %v5277_v42 = vld [vmem:[%s7340_s3 + $0x38] sm:$0xf] }
 0xe45   : > { %v6265_v0 = vpack.c.bf16 %v4517_v60, %v4516_v28  ;;  %v4508_v1 = vadd.f32 %v4507_v63, %v6687_v35  ;;  %v5271_v35 = vld [vmem:[%s7340_s3 + $0x28] sm:$0xf] }
 0xe46   : > { %v4519_v2 = vmax.f32 %v4513_v62, 0.0 }
 0xe47   : > { %v4518_v49 = vmax.f32 %v4508_v1, 0.0  ;;  %6266 = vmatprep.subr.bf16.mxu1 %v6265_v0  ;;  %6274 = vmatprep.subr.bf16.mxu0 %v6265_v0 }
 0xe48   : > { %6268 = vmatpush3.bf16.msra.mxu1 %v6265_v0  ;;  %6276 = vmatpush3.bf16.msra.mxu0 %v6265_v0 }
 0xe49   : > { %v6269_v51 = vpack.c.bf16 %v4519_v2, %v4518_v49 }
 0xe4b   : > { %6270 = vmatprep.subr.bf16.mxu1 %v6269_v51  ;;  %6278 = vmatprep.subr.bf16.mxu0 %v6269_v51 }
 0xe4c   : > { %6272 = vmatpush3.bf16.msra.mxu1 %v6269_v51  ;;  %6280 = vmatpush3.bf16.msra.mxu0 %v6269_v51 }
 0xe4d   : > { %6282 = vmatprep.subr.bf16.mxu1 %v6265_v0  ;;  %6290 = vmatprep.subr.bf16.mxu0 %v6265_v0 }
 0xe4f   : > { %5982 = vmatmul.mubr.msk.f32.vlgmr.msra.gmra.mrb[46].mxu1 %vm584_vm7, %v4521_v34  ;;  %5993 = vmatmul.mubr.msk.f32.vlgmr.msra.gmra.mrb[58].mxu0 %vm584_vm7, %v5265_v36 }
 0xe50   : > { %6284 = vmatpush3.bf16.msra.mxu1 %v6265_v0  ;;  %6292 = vmatpush3.bf16.msra.mxu0 %v6265_v0 }
 0xe51   : > { %6286 = vmatprep.subr.bf16.mxu1 %v6269_v51  ;;  %6294 = vmatprep.subr.bf16.mxu0 %v6269_v51 }
 0xe52   : > { %6003 = vmatprep.mubr.msk.f32.mxu1 %vm584_vm7, %v7170_v11  ;;  %6014 = vmatprep.mubr.msk.f32.mxu0 %vm584_vm7, %v7175_v12 }
 0xe54   : > { %6288 = vmatpush3.bf16.msra.mxu1 %v6269_v51  ;;  %6296 = vmatpush3.bf16.msra.mxu0 %v6269_v51 }
 0xe57   : > { %6004 = vmatmul.mubr.msk.f32.vlgmr.msra.gmra.mrb[48].mxu1 %vm584_vm7, %v5271_v35  ;;  %6015 = vmatmul.mubr.msk.f32.vlgmr.msra.gmra.mrb[60].mxu0 %vm584_vm7, %v5277_v42 }
 0xf22   : > { %v5983_v3 = vpop.f32.mrb[46].mxu1  ;;  %v5994_v9 = vpop.f32.mrb[58].mxu0 }
 0xf23   : > { %v4611_v10 = vmul.f32 %v5983_v3, %v7205_v6  ;;  %v4703_v11 = vmul.f32 %v5994_v9, %v7210_v7  ;;  %v4594_v12 = vpop.f32.mrb[47].mxu1  ;;  %v4686_v57 = vpop.f32.mrb[59].mxu0 }
 0xf24   : > { %v4610_v58 = vmul.f32 %v7205_v6, %v4594_v12  ;;  %v4702_v14 = vmul.f32 %v7210_v7, %v4686_v57 }
 0xf25   : > { %v4705_v15 = vadd.f32 %v4703_v11, %v4611_v10 }
 0xf26   : > { %v4704_v16 = vadd.f32 %v4702_v14, %v4610_v58 }
 0xf2a   : > { %v6005_v17 = vpop.f32.mrb[48].mxu1  ;;  %v6016_v18 = vpop.f32.mrb[60].mxu0 }
 0xf2b   : > { %v4797_v22 = vmul.f32 %v6005_v17, %v7219_v38  ;;  %v4780_v19 = vpop.f32.mrb[49].mxu1  ;;  %v4891_v8 = vmul.f32 %v6016_v18, %v7224_v39  ;;  %v4874_v23 = vpop.f32.mrb[61].mxu0 }
 0xf2c   : > { %v4796_v24 = vmul.f32 %v7219_v38, %v4780_v19  ;;  %v4890_v6 = vmul.f32 %v7224_v39, %v4874_v23 }
 0xf2d   : > { %v4799_v13 = vadd.f32 %v4797_v22, %v4705_v15 }
 0xf2e   : > { %v4798_v7 = vadd.f32 %v4796_v24, %v4704_v16 }
 0xf2f   : > { %v4893_v25 = vadd.f32 %v4891_v8, %v4799_v13 }
 0xf30   : > { %v4892_v32 = vadd.f32 %v4890_v6, %v4798_v7 }
 0xf31   : > { %v4895_v26 = vadd.f32 %v4893_v25, %v6773_v44 }
 0xf32   : > { %v4894_v27 = vadd.f32 %v4892_v32, %v6776_v46 }
 0xf33   : > { %5284 = vst.msk [vmem:[%s6784_s10 + $0x5c] sm:$0xf] %vm975_vm8, %v4895_v26 }
 0xf34   : > { %5282 = vst.msk [vmem:[%s6784_s10 + $0x1c] sm:$0xf] %vm975_vm8, %v4894_v27 }
 0xf35   : > { %5283 = vst.msk [vmem:[%s6784_s10 + $0x38] sm:$0xf0] %vm978_vm9, %v4894_v27 }
 0xf36   : > { %s5285_s23 = sshll.u32 %s6443_s27, 3  ;;  %s6298_s9 = smul.u32 48, %s6447_s28 }
 0xf37   : > { %s4935_s13 = sshll.u32 %s6784_s10, 4  ;;  %s6465_s14 = smov 512   ;;  %s4936_s13 = int_to_ptr.vmem [resolvable:$true] %s4935_s13 }
 0xf38   : > { %s4916_s17 = sadd.s32 %s6298_s9, %s5285_s23  ;;  %6299 = sst [smem:[#allocation6]] (%p6572_p8), %s6465_s14 }
 0xf39   : > { %s5286_s18 = sshll.u32 %s4916_s17, 6  ;;  %s6466_s0 = smov 1024  }
 0xf3a   : > { %s4918_s19 = scalar_lea.hbm %s7344_s7, %s5286_s18  ;;  %6300 = sst [smem:[#allocation6 + $0x1]] (%p6572_p8), %s6466_s0 }
 0xf3b   : > { %s6467_s1 = smov 8   ;;  %s6468_s27 = smov 64  }
 0xf3c   : > { %6301 = sst [smem:[#allocation6 + $0x2]] (%p6572_p8), %s6467_s1  ;;  %s6469_s28 = smov 4  }
 0xf3d   : > { %6302 = sst [smem:[#allocation6 + $0x3]] (%p6572_p8), %s6468_s27  ;;  %s6470_s10 = smov [#allocation5]  }
 0xf3e   : > { %6303 = sst [smem:[#allocation6 + $0x4]] (%p6572_p8), %s6468_s27  ;;  %s6471_s23 = smov 0  }
 0xf3f   : > { %6304 = sst [smem:[#allocation6 + $0x5]] (%p6572_p8), %s6469_s28 }
 0xf40   : > { %6305 = dma.general (%p6572_p8), %s4936_s13, 1536, %s4918_s19, %s4903_s21, %s6470_s10, [#allocation6], %s6471_s23, 0  }
 0xf41 PF: > { %p6311_p1 = scmp.ge.s32.totalorder %s6459_s8, 2  ;;  %s4963_s0 = sand.u32 1, %s6431_s24  }
 0xf42   : > { %s4964_s1 = scalar_lea.sflag [#allocation4], %s4963_s0 }
 0xf43   : > { %p6308_p2 = pnand %p6311_p1, %p6576_p9 }
 0xf45   : > { %6426 = dma.done.wait (!%p6308_p2), %s4964_s1, 1536  }
 0xf46   : > { %6428 = vsyncadd (!%p6308_p2), %s4964_s1, 4294965760  ;;  %s20_s8 = sadd.s32 1, %s6459_s8   ;;  %s7354_s15 = sld [smem:[#allocation8_spill]] }
 0xf47   : > { %p17_p3 = scmp.ge.s32.totalorder %s20_s8, 6   ;;  %s7355_s24 = smov %s6435_s25 }
 0xf48   : > { %s7356_s25 = smov %s6439_s26  ;;  %s7357_s26 = smov %s6584_s20 }
 0xf49   : > { %s7358_s27 = smov %s6451_s29  ;;  %s7359_s28 = smov %s6455_s30 }
 0xf4a   : > { %s7360_s29 = smov %s7363_s11  ;;  %19 = sbr.rel (!%p17_p3) target bundleno = 8 (0x8), region = 160 }
 0xf4c   : > { %s7361_s30 = smov %s7354_s15 }
 0xf51   :  { %4969 = vsyncpa [#allocation4], 1 }
 0xf52   :  { %4971 = vsyncpa [#allocation4 + $0x1], 1 }

</bundles_post_ra>
